<compile_context>
chip_gen: v6e
topology: v6e:2x2x1
jax: 0.10.0
libtpu: 0.0.40
codegen_flags: <defaults>
</compile_context>

<pallas_src>
import functools

import jax
import jax.numpy as jnp
from jax.experimental import pallas as pl
from jax.experimental.pallas import tpu as pltpu


def _leaky_relu(x):
    return jnp.maximum(x, 0.01 * x)


def _aggregate(adj3, x3):
    """agg[b, dst, :] = sum_src adj3[b, dst, src] * x3[b, src, :].

    Unrolled broadcast-FMA over the small source-node axis: stays on the VPU
    (free slot next to the MXU), avoids a batched dot_general that Mosaic
    would otherwise unroll into GB tiny (N,N)@(N,D) MXU matmuls.
    """
    n_src = adj3.shape[-1]
    acc = adj3[:, :, 0:1] * x3[:, 0:1, :]
    for s in range(1, n_src):
        acc = acc + adj3[:, :, s:s + 1] * x3[:, s:s + 1, :]
    return acc


def _kagnet_fused_kernel(adj_ref, feat_ref, sent_ref, nmask_ref, invn_ref,
                         wg1_ref, bg1_ref, wg2_ref, bg2_ref,
                         w1g_ref, w1s_ref, b1_ref, w2_ref, b2_ref,
                         w3qt_ref, w3st_ref, b3_ref,
                         out_ref):
    gb, n, din = feat_ref.shape

    # bf16 HBM streams -> f32 compute (v5e VPU has no bf16 path).
    adj = adj_ref[...].astype(jnp.float32)              # (GB, N, N)
    feat = feat_ref[...].astype(jnp.float32)             # (GB, N, Din)

    # ---- GCN layer 1: h1 = relu((adj @ feat) @ Wg1 + bg1) --------------------
    agg1 = _aggregate(adj, feat).reshape(gb * n, din)
    h1 = jnp.dot(agg1, wg1_ref[...], preferred_element_type=jnp.float32)
    h1 = jnp.maximum(h1 + bg1_ref[...], 0.0)             # (GB*N, H)
    hdim = h1.shape[-1]

    # ---- GCN layer 2: h2 = relu((adj @ h1) @ Wg2 + bg2) ----------------------
    agg2 = _aggregate(adj, h1.reshape(gb, n, hdim)).reshape(gb * n, hdim)
    h2 = jnp.dot(agg2, wg2_ref[...], preferred_element_type=jnp.float32)
    h2 = jnp.maximum(h2 + bg2_ref[...], 0.0)             # (GB*N, Dout)
    dout = h2.shape[-1]

    # ---- dgl.mean_nodes: masked mean over each graph's real nodes ------------
    h2 = h2 * nmask_ref[...]                              # zero padded nodes
    graph_sum = jnp.sum(h2.reshape(gb, n, dout), axis=1)  # (GB, Dout)
    graph_vecs = graph_sum * invn_ref[...]                # / actual node count

    # ---- qas_encoder analogue (Dropout = identity at eval) -------------------
    sent = sent_ref[...]                                  # (GB, sent_dim) f32
    m = jnp.dot(graph_vecs, w1g_ref[...], preferred_element_type=jnp.float32)
    m = m + jnp.dot(sent, w1s_ref[...], preferred_element_type=jnp.float32)
    m = _leaky_relu(m + b1_ref[...])                      # (GB, 2*qas)
    m = jnp.dot(m, w2_ref[...], preferred_element_type=jnp.float32)
    m = _leaky_relu(m + b2_ref[...])                      # (GB, qas)

    # ---- hidden2output: Linear(concat(qas_vec, sent_vec)) -> Sigmoid ---------
    # Computed transposed so the (1, GB) result is lane-dense: a single
    # unmasked 128-lane store instead of a masked (GB, 1) column store.
    logits = jnp.dot(w3qt_ref[...], m.T, preferred_element_type=jnp.float32)
    logits = logits + jnp.dot(w3st_ref[...], sent.T,
                              preferred_element_type=jnp.float32)
    logits = logits + b3_ref[...]                         # (1, GB)
    out_ref[0] = jax.nn.sigmoid(logits)


def fused_forward(adj_bf16, feat_bf16, sent, node_mask, inv_n, gparams, hparams,
                  *, graphs_per_block=128):
    """All-in-one forward.  Shapes: adj (B,N,N) bf16, feat (B,N,Din) bf16,
    sent (B,S) f32, node_mask (B,N) f32, inv_n (B,1) f32.  Returns (B,1) f32.

    graphs_per_block (GB) is the per-grid-step batch tile.  Tune it: 128-256
    amortizes the per-step overhead and fills the MXU; keep the grid length
    (ceil(B/GB)) >= 2 so v7x's two TensorCores both get work.
    """
    B, N, Din = feat_bf16.shape
    sent_dim = sent.shape[-1]

    GB = graphs_per_block
    assert GB % 8 == 0, "graphs_per_block must be a multiple of 8"
    Bp = GB * pl.cdiv(B, GB)
    pad = Bp - B
    if pad:
        # Padded graphs: zero adjacency / features / mask / sent -> finite
        # outputs, sliced away below.
        adj_bf16 = jnp.pad(adj_bf16, ((0, pad), (0, 0), (0, 0)))
        feat_bf16 = jnp.pad(feat_bf16, ((0, pad), (0, 0), (0, 0)))
        sent = jnp.pad(sent, ((0, pad), (0, 0)))
        node_mask = jnp.pad(node_mask, ((0, pad), (0, 0)))
        inv_n = jnp.pad(inv_n, ((0, pad), (0, 0)))
    node_mask_flat = node_mask.reshape(Bp * N, 1)

    H = gparams["w_g1"].shape[-1]
    Dout = gparams["w_g2"].shape[-1]
    q2 = hparams["w1g"].shape[-1]
    q1 = hparams["w2"].shape[-1]

    weights = [gparams["w_g1"], gparams["b_g1"], gparams["w_g2"], gparams["b_g2"],
               hparams["w1g"], hparams["w1s"], hparams["b1"],
               hparams["w2"], hparams["b2"],
               hparams["w3qT"], hparams["w3sT"], hparams["b3"]]

    def resident(arr):
        # Constant block index -> fetched once, stays resident in VMEM.
        return pl.BlockSpec(arr.shape, lambda i: (0, 0))

    wbytes = sum(int(w.size) * 4 for w in weights)
    per_graph_flops = (2 * N * N * Din + 2 * N * Din * H       # layer 1
                       + 2 * N * N * H + 2 * N * H * Dout      # layer 2
                       + 2 * N * Dout                          # pooling
                       + 2 * Dout * q2 + 2 * sent_dim * q2     # head L1
                       + 2 * q2 * q1                           # head L2
                       + 2 * q1 + 2 * sent_dim)                # head L3
    cost = pl.CostEstimate(
        flops=int(Bp * per_graph_flops),
        transcendentals=int(Bp),
        bytes_accessed=int(Bp * N * N * 2 + Bp * N * Din * 2 + Bp * sent_dim * 4
                           + Bp * N * 4 + Bp * 4 + wbytes + Bp * 4))

    out = pl.pallas_call(
        _kagnet_fused_kernel,
        out_shape=jax.ShapeDtypeStruct((Bp // GB, 1, GB), jnp.float32),
        grid_spec=pltpu.PrefetchScalarGridSpec(
            num_scalar_prefetch=0,
            grid=(Bp // GB,),
            in_specs=[
                pl.BlockSpec((GB, N, N), lambda i: (i, 0, 0)),     # adj   bf16
                pl.BlockSpec((GB, N, Din), lambda i: (i, 0, 0)),   # feat  bf16
                pl.BlockSpec((GB, sent_dim), lambda i: (i, 0)),    # sent  f32
                pl.BlockSpec((GB * N, 1), lambda i: (i, 0)),       # node mask
                pl.BlockSpec((GB, 1), lambda i: (i, 0)),           # 1/node count
            ] + [resident(w) for w in weights],
            out_specs=pl.BlockSpec((1, 1, GB), lambda i: (i, 0, 0)),
        ),
        compiler_params=pltpu.CompilerParams(
            dimension_semantics=("parallel",)),
        cost_estimate=cost,
    )(adj_bf16, feat_bf16, sent, node_mask_flat, inv_n, *weights)

    return out.reshape(Bp)[:B].reshape(B, 1)


def kagnet_graph_forward(params, sent_vecs, cncpt_ids, adj, node_counts=None,
                         *, graphs_per_block=128):
    """Embedding gather (glue) + fused Pallas forward."""
    B, N = cncpt_ids.shape
    # Gather from the bf16 copy of the table so the feat HBM stream is already
    # half-width.  TODO(synk): fuse this gather into the kernel (scalar-prefetch
    # ids + manual DMA row gather) to remove the HBM round trip entirely.
    feat = params["emb_bf16"][cncpt_ids]                           # (B, N, Din) bf16

    if node_counts is None:
        node_mask = jnp.ones((B, N), jnp.float32)
    else:
        node_mask = (jnp.arange(N)[None, :] < node_counts[:, None]
                     ).astype(jnp.float32)
    count = jnp.sum(node_mask, axis=1, keepdims=True)
    inv_n = 1.0 / jnp.maximum(count, 1.0)

    adj_bf16 = adj.astype(jnp.bfloat16)        # 0/1 adjacency is exact in bf16
    sent_f32 = sent_vecs.astype(jnp.float32)

    gparams = {"w_g1": params["w_g1"], "b_g1": params["b_g1"],
               "w_g2": params["w_g2"], "b_g2": params["b_g2"]}
    return fused_forward(adj_bf16, feat, sent_f32, node_mask, inv_n,
                         gparams, params["head"],
                         graphs_per_block=graphs_per_block)


# ----------------------------------------------------------------------------
# Deterministic parameter construction.
# ----------------------------------------------------------------------------
def _linear_init(key, fin, fout):
    k1, k2 = jax.random.split(key)
    bound = 1.0 / jnp.sqrt(jnp.float32(fin))
    w = jax.random.uniform(k1, (fin, fout), jnp.float32, -bound, bound)
    b = jax.random.uniform(k2, (1, fout), jnp.float32, -bound, bound)
    return w, b


def build_params(key, num_concepts, concept_dim, graph_hidden, graph_out,
                 sent_dim, qas_encoded_dim):
    k = jax.random.split(key, 6)
    bound = jnp.sqrt(6.0 / concept_dim)
    emb = jax.random.uniform(k[0], (num_concepts, concept_dim), jnp.float32,
                             -bound, bound)

    w_g1, b_g1 = _linear_init(k[1], concept_dim, graph_hidden)
    w_g2, b_g2 = _linear_init(k[2], graph_hidden, graph_out)

    # qas_encoder analogue on concat(graph_vec, sent_vec); Dropout = identity.
    q2 = qas_encoded_dim * 2
    w1, b1 = _linear_init(k[3], graph_out + sent_dim, q2)
    w2, b2 = _linear_init(k[4], q2, qas_encoded_dim)
    # hidden2output on concat(qas_vec, sent_vec).
    # TODO(synk): the lstm_dim (path-LSTM) slice of hidden2output's input is not
    # reproduced (ragged host-side path grouping).
    w3, b3 = _linear_init(k[5], qas_encoded_dim + sent_dim, 1)

    head = {
        "w1g": w1[:graph_out], "w1s": w1[graph_out:], "b1": b1,  # split concat
        "w2": w2, "b2": b2,
        "w3qT": w3[:qas_encoded_dim].T,      # (1, qas)   pre-transposed so the
        "w3sT": w3[qas_encoded_dim:].T,      # (1, sent)  kernel emits lane-dense logits
        "b3": b3,
    }
    return {
        "emb": emb,
        "emb_bf16": emb.astype(jnp.bfloat16),
        "w_g1": w_g1, "b_g1": b_g1, "w_g2": w_g2, "b_g2": b_g2,
        "head": head,
    }


# ----------------------------------------------------------------------------
# Pure-JAX f32 reference (same semantics, no Pallas) for tolerance checking.
# ----------------------------------------------------------------------------
def reference_forward(params, sent_vecs, cncpt_ids, adj, node_counts=None):
    B, N = cncpt_ids.shape
    feat = params["emb"][cncpt_ids]
    h = jnp.einsum('bij,bjd->bid', adj, feat)
    h = jnp.maximum(jnp.einsum('bnd,dh->bnh', h, params["w_g1"]) + params["b_g1"], 0.0)
    h = jnp.einsum('bij,bjd->bid', adj, h)
    h = jnp.maximum(jnp.einsum('bnd,dh->bnh', h, params["w_g2"]) + params["b_g2"], 0.0)
    if node_counts is None:
        mask = jnp.ones((B, N), jnp.float32)
    else:
        mask = (jnp.arange(N)[None, :] < node_counts[:, None]).astype(jnp.float32)
    cnt = jnp.maximum(mask.sum(1, keepdims=True), 1.0)
    gv = (h * mask[:, :, None]).sum(1) / cnt
    hp = params["head"]
    m = gv @ hp["w1g"] + sent_vecs @ hp["w1s"] + hp["b1"]
    m = jnp.maximum(m, 0.01 * m)
    m = m @ hp["w2"] + hp["b2"]
    m = jnp.maximum(m, 0.01 * m)
    logits = m @ hp["w3qT"].T + sent_vecs @ hp["w3sT"].T + hp["b3"]
    return jax.nn.sigmoid(logits)


if __name__ == "__main__":
    B = 10                # graphs / sentences
    N = 8                 # max nodes per graph
    NUM_CONCEPTS = 64
    CONCEPT_DIM = 16
    GRAPH_HIDDEN = 32
    GRAPH_OUT = 16
    SENT_DIM = 32
    QAS_DIM = 8           # qas_encoded_dim  (head: 48 -> 16 -> 8 -> 1)

    key = jax.random.PRNGKey(0)
    kp, kid, kadj, ksent, kcnt = jax.random.split(key, 5)

    params = build_params(kp, NUM_CONCEPTS, CONCEPT_DIM, GRAPH_HIDDEN,
                          GRAPH_OUT, SENT_DIM, QAS_DIM)

    cncpt_ids = jax.random.randint(kid, (B, N), 0, NUM_CONCEPTS, jnp.int32)
    node_counts = jax.random.randint(kcnt, (B,), 3, N + 1, jnp.int32)
    valid = (jnp.arange(N)[None, :] < node_counts[:, None]).astype(jnp.float32)
    # random directed edges + self loops, restricted to real nodes; adj[b,dst,src]
    adj = jax.random.bernoulli(kadj, 0.3, (B, N, N)).astype(jnp.float32)
    adj = jnp.maximum(adj, jnp.eye(N, dtype=jnp.float32)[None])
    adj = adj * valid[:, :, None] * valid[:, None, :]
    sent_vecs = jax.random.normal(ksent, (B, SENT_DIM), jnp.float32)

    ref = reference_forward(params, sent_vecs, cncpt_ids, adj, node_counts)

    # Run both a small block (grid=2, exercises batch padding + multi-step
    # pipeline) and the production default block size.
    for gb in (8, 128):
        fwd = jax.jit(functools.partial(kagnet_graph_forward, params,
                                        graphs_per_block=gb))
        out = jax.block_until_ready(fwd(sent_vecs, cncpt_ids, adj, node_counts))
        assert out.shape == (B, 1)
        assert bool(jnp.all(jnp.isfinite(out)))
        assert bool(jnp.all((out >= 0.0) & (out <= 1.0)))
        err = float(jnp.max(jnp.abs(out - ref)))
        assert err < 2e-2, (gb, err)

    print("KERNEL_OK")
</pallas_src>

<mosaic_0001>
module attributes {stable_mosaic.version = 11 : i64} {
  func.func @_kagnet_fused_kernel(%arg0: i32, %arg1: memref<8x8x8xbf16, #tpu.memory_space<vmem>>, %arg2: memref<8x8x16xbf16, #tpu.memory_space<vmem>>, %arg3: memref<8x32xf32, #tpu.memory_space<vmem>>, %arg4: memref<64x1xf32, #tpu.memory_space<vmem>>, %arg5: memref<8x1xf32, #tpu.memory_space<vmem>>, %arg6: memref<16x32xf32, #tpu.memory_space<vmem>>, %arg7: memref<1x32xf32, #tpu.memory_space<vmem>>, %arg8: memref<32x16xf32, #tpu.memory_space<vmem>>, %arg9: memref<1x16xf32, #tpu.memory_space<vmem>>, %arg10: memref<16x16xf32, #tpu.memory_space<vmem>>, %arg11: memref<32x16xf32, #tpu.memory_space<vmem>>, %arg12: memref<1x16xf32, #tpu.memory_space<vmem>>, %arg13: memref<16x8xf32, #tpu.memory_space<vmem>>, %arg14: memref<1x8xf32, #tpu.memory_space<vmem>>, %arg15: memref<1x8xf32, #tpu.memory_space<vmem>>, %arg16: memref<1x32xf32, #tpu.memory_space<vmem>>, %arg17: memref<1x1xf32, #tpu.memory_space<vmem>>, %arg18: memref<1x1x8xf32, #tpu.memory_space<vmem>>) attributes {dimension_semantics = [#tpu.dimension_semantics<parallel>], iteration_bounds = array<i64: 2>, scalar_prefetch = 0 : i64, scratch_operands = 0 : i64, tpu.core_type = #tpu.core_type<tc>, window_params = [{transform_indices = @transform_0, window_bounds = array<i64: 8, 8, 8>}, {transform_indices = @transform_1, window_bounds = array<i64: 8, 8, 16>}, {transform_indices = @transform_2, window_bounds = array<i64: 8, 32>}, {transform_indices = @transform_3, window_bounds = array<i64: 64, 1>}, {transform_indices = @transform_4, window_bounds = array<i64: 8, 1>}, {pipeline_mode = #tpu.pipeline_mode<synchronous>, transform_indices = @transform_5, window_bounds = array<i64: 16, 32>}, {pipeline_mode = #tpu.pipeline_mode<synchronous>, transform_indices = @transform_6, window_bounds = array<i64: 1, 32>}, {pipeline_mode = #tpu.pipeline_mode<synchronous>, transform_indices = @transform_7, window_bounds = array<i64: 32, 16>}, {pipeline_mode = #tpu.pipeline_mode<synchronous>, transform_indices = @transform_8, window_bounds = array<i64: 1, 16>}, {pipeline_mode = #tpu.pipeline_mode<synchronous>, transform_indices = @transform_9, window_bounds = array<i64: 16, 16>}, {pipeline_mode = #tpu.pipeline_mode<synchronous>, transform_indices = @transform_10, window_bounds = array<i64: 32, 16>}, {pipeline_mode = #tpu.pipeline_mode<synchronous>, transform_indices = @transform_11, window_bounds = array<i64: 1, 16>}, {pipeline_mode = #tpu.pipeline_mode<synchronous>, transform_indices = @transform_12, window_bounds = array<i64: 16, 8>}, {pipeline_mode = #tpu.pipeline_mode<synchronous>, transform_indices = @transform_13, window_bounds = array<i64: 1, 8>}, {pipeline_mode = #tpu.pipeline_mode<synchronous>, transform_indices = @transform_14, window_bounds = array<i64: 1, 8>}, {pipeline_mode = #tpu.pipeline_mode<synchronous>, transform_indices = @transform_15, window_bounds = array<i64: 1, 32>}, {pipeline_mode = #tpu.pipeline_mode<synchronous>, transform_indices = @transform_16, window_bounds = array<i64: 1, 1>}, {transform_indices = @transform_17, window_bounds = array<i64: 1, 1, 8>}]} {
    %c0 = arith.constant 0 : index
    %c0_0 = arith.constant 0 : index
    %c0_1 = arith.constant 0 : index
    %0 = vector.load %arg1[%c0, %c0_0, %c0_1] : memref<8x8x8xbf16, #tpu.memory_space<vmem>>, vector<8x8x8xbf16>
    %1 = arith.extf %0 : vector<8x8x8xbf16> to vector<8x8x8xf32>
    %c0_2 = arith.constant 0 : index
    %c0_3 = arith.constant 0 : index
    %c0_4 = arith.constant 0 : index
    %2 = vector.load %arg2[%c0_2, %c0_3, %c0_4] : memref<8x8x16xbf16, #tpu.memory_space<vmem>>, vector<8x8x16xbf16>
    %3 = arith.extf %2 : vector<8x8x16xbf16> to vector<8x8x16xf32>
    %4 = vector.extract_strided_slice %1 {offsets = [0, 0, 0], sizes = [8, 8, 1], strides = [1, 1, 1]} : vector<8x8x8xf32> to vector<8x8x1xf32>
    %5 = vector.extract_strided_slice %3 {offsets = [0, 0, 0], sizes = [8, 1, 16], strides = [1, 1, 1]} : vector<8x8x16xf32> to vector<8x1x16xf32>
    %6 = vector.broadcast %4 : vector<8x8x1xf32> to vector<8x8x16xf32>
    %7 = vector.broadcast %5 : vector<8x1x16xf32> to vector<8x8x16xf32>
    %8 = arith.mulf %6, %7 : vector<8x8x16xf32>
    %9 = vector.extract_strided_slice %1 {offsets = [0, 0, 1], sizes = [8, 8, 1], strides = [1, 1, 1]} : vector<8x8x8xf32> to vector<8x8x1xf32>
    %10 = vector.extract_strided_slice %3 {offsets = [0, 1, 0], sizes = [8, 1, 16], strides = [1, 1, 1]} : vector<8x8x16xf32> to vector<8x1x16xf32>
    %11 = vector.broadcast %9 : vector<8x8x1xf32> to vector<8x8x16xf32>
    %12 = vector.broadcast %10 : vector<8x1x16xf32> to vector<8x8x16xf32>
    %13 = arith.mulf %11, %12 : vector<8x8x16xf32>
    %14 = arith.addf %8, %13 : vector<8x8x16xf32>
    %15 = vector.extract_strided_slice %1 {offsets = [0, 0, 2], sizes = [8, 8, 1], strides = [1, 1, 1]} : vector<8x8x8xf32> to vector<8x8x1xf32>
    %16 = vector.extract_strided_slice %3 {offsets = [0, 2, 0], sizes = [8, 1, 16], strides = [1, 1, 1]} : vector<8x8x16xf32> to vector<8x1x16xf32>
    %17 = vector.broadcast %15 : vector<8x8x1xf32> to vector<8x8x16xf32>
    %18 = vector.broadcast %16 : vector<8x1x16xf32> to vector<8x8x16xf32>
    %19 = arith.mulf %17, %18 : vector<8x8x16xf32>
    %20 = arith.addf %14, %19 : vector<8x8x16xf32>
    %21 = vector.extract_strided_slice %1 {offsets = [0, 0, 3], sizes = [8, 8, 1], strides = [1, 1, 1]} : vector<8x8x8xf32> to vector<8x8x1xf32>
    %22 = vector.extract_strided_slice %3 {offsets = [0, 3, 0], sizes = [8, 1, 16], strides = [1, 1, 1]} : vector<8x8x16xf32> to vector<8x1x16xf32>
    %23 = vector.broadcast %21 : vector<8x8x1xf32> to vector<8x8x16xf32>
    %24 = vector.broadcast %22 : vector<8x1x16xf32> to vector<8x8x16xf32>
    %25 = arith.mulf %23, %24 : vector<8x8x16xf32>
    %26 = arith.addf %20, %25 : vector<8x8x16xf32>
    %27 = vector.extract_strided_slice %1 {offsets = [0, 0, 4], sizes = [8, 8, 1], strides = [1, 1, 1]} : vector<8x8x8xf32> to vector<8x8x1xf32>
    %28 = vector.extract_strided_slice %3 {offsets = [0, 4, 0], sizes = [8, 1, 16], strides = [1, 1, 1]} : vector<8x8x16xf32> to vector<8x1x16xf32>
    %29 = vector.broadcast %27 : vector<8x8x1xf32> to vector<8x8x16xf32>
    %30 = vector.broadcast %28 : vector<8x1x16xf32> to vector<8x8x16xf32>
    %31 = arith.mulf %29, %30 : vector<8x8x16xf32>
    %32 = arith.addf %26, %31 : vector<8x8x16xf32>
    %33 = vector.extract_strided_slice %1 {offsets = [0, 0, 5], sizes = [8, 8, 1], strides = [1, 1, 1]} : vector<8x8x8xf32> to vector<8x8x1xf32>
    %34 = vector.extract_strided_slice %3 {offsets = [0, 5, 0], sizes = [8, 1, 16], strides = [1, 1, 1]} : vector<8x8x16xf32> to vector<8x1x16xf32>
    %35 = vector.broadcast %33 : vector<8x8x1xf32> to vector<8x8x16xf32>
    %36 = vector.broadcast %34 : vector<8x1x16xf32> to vector<8x8x16xf32>
    %37 = arith.mulf %35, %36 : vector<8x8x16xf32>
    %38 = arith.addf %32, %37 : vector<8x8x16xf32>
    %39 = vector.extract_strided_slice %1 {offsets = [0, 0, 6], sizes = [8, 8, 1], strides = [1, 1, 1]} : vector<8x8x8xf32> to vector<8x8x1xf32>
    %40 = vector.extract_strided_slice %3 {offsets = [0, 6, 0], sizes = [8, 1, 16], strides = [1, 1, 1]} : vector<8x8x16xf32> to vector<8x1x16xf32>
    %41 = vector.broadcast %39 : vector<8x8x1xf32> to vector<8x8x16xf32>
    %42 = vector.broadcast %40 : vector<8x1x16xf32> to vector<8x8x16xf32>
    %43 = arith.mulf %41, %42 : vector<8x8x16xf32>
    %44 = arith.addf %38, %43 : vector<8x8x16xf32>
    %45 = vector.extract_strided_slice %1 {offsets = [0, 0, 7], sizes = [8, 8, 1], strides = [1, 1, 1]} : vector<8x8x8xf32> to vector<8x8x1xf32>
    %46 = vector.extract_strided_slice %3 {offsets = [0, 7, 0], sizes = [8, 1, 16], strides = [1, 1, 1]} : vector<8x8x16xf32> to vector<8x1x16xf32>
    %47 = vector.broadcast %45 : vector<8x8x1xf32> to vector<8x8x16xf32>
    %48 = vector.broadcast %46 : vector<8x1x16xf32> to vector<8x8x16xf32>
    %49 = arith.mulf %47, %48 : vector<8x8x16xf32>
    %50 = arith.addf %44, %49 : vector<8x8x16xf32>
    %51 = vector.shape_cast %50 : vector<8x8x16xf32> to vector<64x16xf32>
    %c0_5 = arith.constant 0 : index
    %c0_6 = arith.constant 0 : index
    %52 = vector.load %arg6[%c0_5, %c0_6] : memref<16x32xf32, #tpu.memory_space<vmem>>, vector<16x32xf32>
    %cst = arith.constant dense<0.000000e+00> : vector<64x32xf32>
    %53 = tpu.matmul %51, %52, %cst {dimension_numbers = #tpu.dot_dimension_numbers<[1], [0], [0], [1], [0, 0, 1, 1], [], []>} : vector<64x16xf32>, vector<16x32xf32>, vector<64x32xf32> -> vector<64x32xf32>
    %c0_7 = arith.constant 0 : index
    %c0_8 = arith.constant 0 : index
    %54 = vector.load %arg7[%c0_7, %c0_8] : memref<1x32xf32, #tpu.memory_space<vmem>>, vector<1x32xf32>
    %55 = vector.broadcast %54 : vector<1x32xf32> to vector<64x32xf32>
    %56 = arith.addf %53, %55 : vector<64x32xf32>
    %cst_9 = arith.constant 0.000000e+00 : f32
    %57 = vector.broadcast %cst_9 : f32 to vector<64x32xf32>
    %58 = arith.maximumf %56, %57 : vector<64x32xf32>
    %59 = vector.shape_cast %58 : vector<64x32xf32> to vector<8x8x32xf32>
    %60 = vector.extract_strided_slice %1 {offsets = [0, 0, 0], sizes = [8, 8, 1], strides = [1, 1, 1]} : vector<8x8x8xf32> to vector<8x8x1xf32>
    %61 = vector.extract_strided_slice %59 {offsets = [0, 0, 0], sizes = [8, 1, 32], strides = [1, 1, 1]} : vector<8x8x32xf32> to vector<8x1x32xf32>
    %62 = vector.broadcast %60 : vector<8x8x1xf32> to vector<8x8x32xf32>
    %63 = vector.broadcast %61 : vector<8x1x32xf32> to vector<8x8x32xf32>
    %64 = arith.mulf %62, %63 : vector<8x8x32xf32>
    %65 = vector.extract_strided_slice %1 {offsets = [0, 0, 1], sizes = [8, 8, 1], strides = [1, 1, 1]} : vector<8x8x8xf32> to vector<8x8x1xf32>
    %66 = vector.extract_strided_slice %59 {offsets = [0, 1, 0], sizes = [8, 1, 32], strides = [1, 1, 1]} : vector<8x8x32xf32> to vector<8x1x32xf32>
    %67 = vector.broadcast %65 : vector<8x8x1xf32> to vector<8x8x32xf32>
    %68 = vector.broadcast %66 : vector<8x1x32xf32> to vector<8x8x32xf32>
    %69 = arith.mulf %67, %68 : vector<8x8x32xf32>
    %70 = arith.addf %64, %69 : vector<8x8x32xf32>
    %71 = vector.extract_strided_slice %1 {offsets = [0, 0, 2], sizes = [8, 8, 1], strides = [1, 1, 1]} : vector<8x8x8xf32> to vector<8x8x1xf32>
    %72 = vector.extract_strided_slice %59 {offsets = [0, 2, 0], sizes = [8, 1, 32], strides = [1, 1, 1]} : vector<8x8x32xf32> to vector<8x1x32xf32>
    %73 = vector.broadcast %71 : vector<8x8x1xf32> to vector<8x8x32xf32>
    %74 = vector.broadcast %72 : vector<8x1x32xf32> to vector<8x8x32xf32>
    %75 = arith.mulf %73, %74 : vector<8x8x32xf32>
    %76 = arith.addf %70, %75 : vector<8x8x32xf32>
    %77 = vector.extract_strided_slice %1 {offsets = [0, 0, 3], sizes = [8, 8, 1], strides = [1, 1, 1]} : vector<8x8x8xf32> to vector<8x8x1xf32>
    %78 = vector.extract_strided_slice %59 {offsets = [0, 3, 0], sizes = [8, 1, 32], strides = [1, 1, 1]} : vector<8x8x32xf32> to vector<8x1x32xf32>
    %79 = vector.broadcast %77 : vector<8x8x1xf32> to vector<8x8x32xf32>
    %80 = vector.broadcast %78 : vector<8x1x32xf32> to vector<8x8x32xf32>
    %81 = arith.mulf %79, %80 : vector<8x8x32xf32>
    %82 = arith.addf %76, %81 : vector<8x8x32xf32>
    %83 = vector.extract_strided_slice %1 {offsets = [0, 0, 4], sizes = [8, 8, 1], strides = [1, 1, 1]} : vector<8x8x8xf32> to vector<8x8x1xf32>
    %84 = vector.extract_strided_slice %59 {offsets = [0, 4, 0], sizes = [8, 1, 32], strides = [1, 1, 1]} : vector<8x8x32xf32> to vector<8x1x32xf32>
    %85 = vector.broadcast %83 : vector<8x8x1xf32> to vector<8x8x32xf32>
    %86 = vector.broadcast %84 : vector<8x1x32xf32> to vector<8x8x32xf32>
    %87 = arith.mulf %85, %86 : vector<8x8x32xf32>
    %88 = arith.addf %82, %87 : vector<8x8x32xf32>
    %89 = vector.extract_strided_slice %1 {offsets = [0, 0, 5], sizes = [8, 8, 1], strides = [1, 1, 1]} : vector<8x8x8xf32> to vector<8x8x1xf32>
    %90 = vector.extract_strided_slice %59 {offsets = [0, 5, 0], sizes = [8, 1, 32], strides = [1, 1, 1]} : vector<8x8x32xf32> to vector<8x1x32xf32>
    %91 = vector.broadcast %89 : vector<8x8x1xf32> to vector<8x8x32xf32>
    %92 = vector.broadcast %90 : vector<8x1x32xf32> to vector<8x8x32xf32>
    %93 = arith.mulf %91, %92 : vector<8x8x32xf32>
    %94 = arith.addf %88, %93 : vector<8x8x32xf32>
    %95 = vector.extract_strided_slice %1 {offsets = [0, 0, 6], sizes = [8, 8, 1], strides = [1, 1, 1]} : vector<8x8x8xf32> to vector<8x8x1xf32>
    %96 = vector.extract_strided_slice %59 {offsets = [0, 6, 0], sizes = [8, 1, 32], strides = [1, 1, 1]} : vector<8x8x32xf32> to vector<8x1x32xf32>
    %97 = vector.broadcast %95 : vector<8x8x1xf32> to vector<8x8x32xf32>
    %98 = vector.broadcast %96 : vector<8x1x32xf32> to vector<8x8x32xf32>
    %99 = arith.mulf %97, %98 : vector<8x8x32xf32>
    %100 = arith.addf %94, %99 : vector<8x8x32xf32>
    %101 = vector.extract_strided_slice %1 {offsets = [0, 0, 7], sizes = [8, 8, 1], strides = [1, 1, 1]} : vector<8x8x8xf32> to vector<8x8x1xf32>
    %102 = vector.extract_strided_slice %59 {offsets = [0, 7, 0], sizes = [8, 1, 32], strides = [1, 1, 1]} : vector<8x8x32xf32> to vector<8x1x32xf32>
    %103 = vector.broadcast %101 : vector<8x8x1xf32> to vector<8x8x32xf32>
    %104 = vector.broadcast %102 : vector<8x1x32xf32> to vector<8x8x32xf32>
    %105 = arith.mulf %103, %104 : vector<8x8x32xf32>
    %106 = arith.addf %100, %105 : vector<8x8x32xf32>
    %107 = vector.shape_cast %106 : vector<8x8x32xf32> to vector<64x32xf32>
    %c0_10 = arith.constant 0 : index
    %c0_11 = arith.constant 0 : index
    %108 = vector.load %arg8[%c0_10, %c0_11] : memref<32x16xf32, #tpu.memory_space<vmem>>, vector<32x16xf32>
    %cst_12 = arith.constant dense<0.000000e+00> : vector<64x16xf32>
    %109 = tpu.matmul %107, %108, %cst_12 {dimension_numbers = #tpu.dot_dimension_numbers<[1], [0], [0], [1], [0, 0, 1, 1], [], []>} : vector<64x32xf32>, vector<32x16xf32>, vector<64x16xf32> -> vector<64x16xf32>
    %c0_13 = arith.constant 0 : index
    %c0_14 = arith.constant 0 : index
    %110 = vector.load %arg9[%c0_13, %c0_14] : memref<1x16xf32, #tpu.memory_space<vmem>>, vector<1x16xf32>
    %111 = vector.broadcast %110 : vector<1x16xf32> to vector<64x16xf32>
    %112 = arith.addf %109, %111 : vector<64x16xf32>
    %cst_15 = arith.constant 0.000000e+00 : f32
    %113 = vector.broadcast %cst_15 : f32 to vector<64x16xf32>
    %114 = arith.maximumf %112, %113 : vector<64x16xf32>
    %c0_16 = arith.constant 0 : index
    %c0_17 = arith.constant 0 : index
    %115 = vector.load %arg4[%c0_16, %c0_17] : memref<64x1xf32, #tpu.memory_space<vmem>>, vector<64x1xf32>
    %116 = vector.broadcast %115 : vector<64x1xf32> to vector<64x16xf32>
    %117 = arith.mulf %114, %116 : vector<64x16xf32>
    %118 = vector.shape_cast %117 : vector<64x16xf32> to vector<8x8x16xf32>
    %cst_18 = arith.constant dense<0.000000e+00> : vector<8x16xf32>
    %119 = vector.multi_reduction <add>, %118, %cst_18 [1] : vector<8x8x16xf32> to vector<8x16xf32>
    %c0_19 = arith.constant 0 : index
    %c0_20 = arith.constant 0 : index
    %120 = vector.load %arg5[%c0_19, %c0_20] : memref<8x1xf32, #tpu.memory_space<vmem>>, vector<8x1xf32>
    %121 = vector.broadcast %120 : vector<8x1xf32> to vector<8x16xf32>
    %122 = arith.mulf %119, %121 : vector<8x16xf32>
    %c0_21 = arith.constant 0 : index
    %c0_22 = arith.constant 0 : index
    %123 = vector.load %arg3[%c0_21, %c0_22] : memref<8x32xf32, #tpu.memory_space<vmem>>, vector<8x32xf32>
    %c0_23 = arith.constant 0 : index
    %c0_24 = arith.constant 0 : index
    %124 = vector.load %arg10[%c0_23, %c0_24] : memref<16x16xf32, #tpu.memory_space<vmem>>, vector<16x16xf32>
    %cst_25 = arith.constant dense<0.000000e+00> : vector<8x16xf32>
    %125 = tpu.matmul %122, %124, %cst_25 {dimension_numbers = #tpu.dot_dimension_numbers<[1], [0], [0], [1], [0, 0, 1, 1], [], []>} : vector<8x16xf32>, vector<16x16xf32>, vector<8x16xf32> -> vector<8x16xf32>
    %c0_26 = arith.constant 0 : index
    %c0_27 = arith.constant 0 : index
    %126 = vector.load %arg11[%c0_26, %c0_27] : memref<32x16xf32, #tpu.memory_space<vmem>>, vector<32x16xf32>
    %cst_28 = arith.constant dense<0.000000e+00> : vector<8x16xf32>
    %127 = tpu.matmul %123, %126, %cst_28 {dimension_numbers = #tpu.dot_dimension_numbers<[1], [0], [0], [1], [0, 0, 1, 1], [], []>} : vector<8x32xf32>, vector<32x16xf32>, vector<8x16xf32> -> vector<8x16xf32>
    %128 = arith.addf %125, %127 : vector<8x16xf32>
    %c0_29 = arith.constant 0 : index
    %c0_30 = arith.constant 0 : index
    %129 = vector.load %arg12[%c0_29, %c0_30] : memref<1x16xf32, #tpu.memory_space<vmem>>, vector<1x16xf32>
    %130 = vector.broadcast %129 : vector<1x16xf32> to vector<8x16xf32>
    %131 = arith.addf %128, %130 : vector<8x16xf32>
    %cst_31 = arith.constant 0.00999999977 : f32
    %132 = vector.broadcast %cst_31 : f32 to vector<8x16xf32>
    %133 = arith.mulf %132, %131 : vector<8x16xf32>
    %134 = arith.maximumf %131, %133 : vector<8x16xf32>
    %c0_32 = arith.constant 0 : index
    %c0_33 = arith.constant 0 : index
    %135 = vector.load %arg13[%c0_32, %c0_33] : memref<16x8xf32, #tpu.memory_space<vmem>>, vector<16x8xf32>
    %cst_34 = arith.constant dense<0.000000e+00> : vector<8x8xf32>
    %136 = tpu.matmul %134, %135, %cst_34 {dimension_numbers = #tpu.dot_dimension_numbers<[1], [0], [0], [1], [0, 0, 1, 1], [], []>} : vector<8x16xf32>, vector<16x8xf32>, vector<8x8xf32> -> vector<8x8xf32>
    %c0_35 = arith.constant 0 : index
    %c0_36 = arith.constant 0 : index
    %137 = vector.load %arg14[%c0_35, %c0_36] : memref<1x8xf32, #tpu.memory_space<vmem>>, vector<1x8xf32>
    %138 = vector.broadcast %137 : vector<1x8xf32> to vector<8x8xf32>
    %139 = arith.addf %136, %138 : vector<8x8xf32>
    %cst_37 = arith.constant 0.00999999977 : f32
    %140 = vector.broadcast %cst_37 : f32 to vector<8x8xf32>
    %141 = arith.mulf %140, %139 : vector<8x8xf32>
    %142 = arith.maximumf %139, %141 : vector<8x8xf32>
    %c0_38 = arith.constant 0 : index
    %c0_39 = arith.constant 0 : index
    %143 = vector.load %arg15[%c0_38, %c0_39] : memref<1x8xf32, #tpu.memory_space<vmem>>, vector<1x8xf32>
    %144 = tpu.transpose %142, [1, 0] : vector<8x8xf32> -> vector<8x8xf32>
    %cst_40 = arith.constant dense<0.000000e+00> : vector<1x8xf32>
    %145 = tpu.matmul %143, %144, %cst_40 {dimension_numbers = #tpu.dot_dimension_numbers<[1], [0], [0], [1], [0, 0, 1, 1], [], []>} : vector<1x8xf32>, vector<8x8xf32>, vector<1x8xf32> -> vector<1x8xf32>
    %c0_41 = arith.constant 0 : index
    %c0_42 = arith.constant 0 : index
    %146 = vector.load %arg16[%c0_41, %c0_42] : memref<1x32xf32, #tpu.memory_space<vmem>>, vector<1x32xf32>
    %147 = tpu.transpose %123, [1, 0] : vector<8x32xf32> -> vector<32x8xf32>
    %cst_43 = arith.constant dense<0.000000e+00> : vector<1x8xf32>
    %148 = tpu.matmul %146, %147, %cst_43 {dimension_numbers = #tpu.dot_dimension_numbers<[1], [0], [0], [1], [0, 0, 1, 1], [], []>} : vector<1x32xf32>, vector<32x8xf32>, vector<1x8xf32> -> vector<1x8xf32>
    %149 = arith.addf %145, %148 : vector<1x8xf32>
    %c0_44 = arith.constant 0 : index
    %c0_45 = arith.constant 0 : index
    %150 = vector.load %arg17[%c0_44, %c0_45] : memref<1x1xf32, #tpu.memory_space<vmem>>, vector<1x1xf32>
    %151 = vector.broadcast %150 : vector<1x1xf32> to vector<1x8xf32>
    %152 = arith.addf %149, %151 : vector<1x8xf32>
    %153 = arith.negf %152 : vector<1x8xf32>
    %154 = math.exp %153 : vector<1x8xf32>
    %cst_46 = arith.constant 1.000000e+00 : f32
    %155 = vector.broadcast %cst_46 : f32 to vector<1x8xf32>
    %156 = arith.addf %155, %154 : vector<1x8xf32>
    %157 = arith.divf %155, %156 : vector<1x8xf32>
    %c0_47 = arith.constant 0 : index
    %c0_48 = arith.constant 0 : index
    %c0_49 = arith.constant 0 : index
    %158 = vector.load %arg18[%c0_47, %c0_48, %c0_49] : memref<1x1x8xf32, #tpu.memory_space<vmem>>, vector<1x1x8xf32>
    %159 = vector.shape_cast %158 : vector<1x1x8xf32> to vector<1x8xf32>
    %160 = vector.shape_cast %157 : vector<1x8xf32> to vector<1x1x8xf32>
    tpu.vector_store %arg18[%c0_47, %c0_48, %c0_49], %160 {strides = array<i32>} : memref<1x1x8xf32, #tpu.memory_space<vmem>>, vector<1x1x8xf32>,
    return
  }
  func.func @transform_0(%arg0: i32) -> (i32, i32, i32) {
    %c0_i32 = arith.constant 0 : i32
    %c0_i32_0 = arith.constant 0 : i32
    %c0_i32_1 = arith.constant 0 : i32
    return %arg0, %c0_i32, %c0_i32_0 : i32, i32, i32
  }
  func.func @transform_1(%arg0: i32) -> (i32, i32, i32) {
    %c0_i32 = arith.constant 0 : i32
    %c0_i32_0 = arith.constant 0 : i32
    %c0_i32_1 = arith.constant 0 : i32
    return %arg0, %c0_i32, %c0_i32_0 : i32, i32, i32
  }
  func.func @transform_2(%arg0: i32) -> (i32, i32) {
    %c0_i32 = arith.constant 0 : i32
    %c0_i32_0 = arith.constant 0 : i32
    return %arg0, %c0_i32 : i32, i32
  }
  func.func @transform_3(%arg0: i32) -> (i32, i32) {
    %c0_i32 = arith.constant 0 : i32
    %c0_i32_0 = arith.constant 0 : i32
    return %arg0, %c0_i32 : i32, i32
  }
  func.func @transform_4(%arg0: i32) -> (i32, i32) {
    %c0_i32 = arith.constant 0 : i32
    %c0_i32_0 = arith.constant 0 : i32
    return %arg0, %c0_i32 : i32, i32
  }
  func.func @transform_5(%arg0: i32) -> (i32, i32) {
    %c0_i32 = arith.constant 0 : i32
    %c0_i32_0 = arith.constant 0 : i32
    %c0_i32_1 = arith.constant 0 : i32
    return %c0_i32, %c0_i32_0 : i32, i32
  }
  func.func @transform_6(%arg0: i32) -> (i32, i32) {
    %c0_i32 = arith.constant 0 : i32
    %c0_i32_0 = arith.constant 0 : i32
    %c0_i32_1 = arith.constant 0 : i32
    return %c0_i32, %c0_i32_0 : i32, i32
  }
  func.func @transform_7(%arg0: i32) -> (i32, i32) {
    %c0_i32 = arith.constant 0 : i32
    %c0_i32_0 = arith.constant 0 : i32
    %c0_i32_1 = arith.constant 0 : i32
    return %c0_i32, %c0_i32_0 : i32, i32
  }
  func.func @transform_8(%arg0: i32) -> (i32, i32) {
    %c0_i32 = arith.constant 0 : i32
    %c0_i32_0 = arith.constant 0 : i32
    %c0_i32_1 = arith.constant 0 : i32
    return %c0_i32, %c0_i32_0 : i32, i32
  }
  func.func @transform_9(%arg0: i32) -> (i32, i32) {
    %c0_i32 = arith.constant 0 : i32
    %c0_i32_0 = arith.constant 0 : i32
    %c0_i32_1 = arith.constant 0 : i32
    return %c0_i32, %c0_i32_0 : i32, i32
  }
  func.func @transform_10(%arg0: i32) -> (i32, i32) {
    %c0_i32 = arith.constant 0 : i32
    %c0_i32_0 = arith.constant 0 : i32
    %c0_i32_1 = arith.constant 0 : i32
    return %c0_i32, %c0_i32_0 : i32, i32
  }
  func.func @transform_11(%arg0: i32) -> (i32, i32) {
    %c0_i32 = arith.constant 0 : i32
    %c0_i32_0 = arith.constant 0 : i32
    %c0_i32_1 = arith.constant 0 : i32
    return %c0_i32, %c0_i32_0 : i32, i32
  }
  func.func @transform_12(%arg0: i32) -> (i32, i32) {
    %c0_i32 = arith.constant 0 : i32
    %c0_i32_0 = arith.constant 0 : i32
    %c0_i32_1 = arith.constant 0 : i32
    return %c0_i32, %c0_i32_0 : i32, i32
  }
  func.func @transform_13(%arg0: i32) -> (i32, i32) {
    %c0_i32 = arith.constant 0 : i32
    %c0_i32_0 = arith.constant 0 : i32
    %c0_i32_1 = arith.constant 0 : i32
    return %c0_i32, %c0_i32_0 : i32, i32
  }
  func.func @transform_14(%arg0: i32) -> (i32, i32) {
    %c0_i32 = arith.constant 0 : i32
    %c0_i32_0 = arith.constant 0 : i32
    %c0_i32_1 = arith.constant 0 : i32
    return %c0_i32, %c0_i32_0 : i32, i32
  }
  func.func @transform_15(%arg0: i32) -> (i32, i32) {
    %c0_i32 = arith.constant 0 : i32
    %c0_i32_0 = arith.constant 0 : i32
    %c0_i32_1 = arith.constant 0 : i32
    return %c0_i32, %c0_i32_0 : i32, i32
  }
  func.func @transform_16(%arg0: i32) -> (i32, i32) {
    %c0_i32 = arith.constant 0 : i32
    %c0_i32_0 = arith.constant 0 : i32
    %c0_i32_1 = arith.constant 0 : i32
    return %c0_i32, %c0_i32_0 : i32, i32
  }
  func.func @transform_17(%arg0: i32) -> (i32, i32, i32) {
    %c0_i32 = arith.constant 0 : i32
    %c0_i32_0 = arith.constant 0 : i32
    %c0_i32_1 = arith.constant 0 : i32
    return %arg0, %c0_i32, %c0_i32_0 : i32, i32, i32
  }
}

</mosaic_0001>

<bundles_post_ra>
// kernel: kagnet_graph_forward.1
= control target key start
LH: loop header
LB: loop body
LE: loop exit
PB: predicated region body
PF: predicated region fallthrough
CT: control target
= control target key end

     0   :  { %s3166_s26 = smov 0   ;;  %s4186_s0 = inlined_call_operand.vmem [shape: bf16[16,8,8], index: 0, kind: input, shape index: {}]   ;;  %s4187_s1 = inlined_call_operand.vmem [shape: bf16[16,8,16], index: 1, kind: input, shape index: {}]   ;;  %s4188_s2 = inlined_call_operand.vmem [shape: f32[16,32], index: 2, kind: input, shape index: {}]   ;;  %s4189_s3 = inlined_call_operand.vmem [shape: f32[128,1], index: 3, kind: input, shape index: {}]   ;;  %s4190_s4 = inlined_call_operand.vmem [shape: f32[16,1], index: 4, kind: input, shape index: {}]   ;;  %s4191_s5 = inlined_call_operand.vmem [shape: f32[16,32], index: 5, kind: input, shape index: {}]   ;;  %s4192_s6 = inlined_call_operand.vmem [shape: f32[1,32], index: 6, kind: input, shape index: {}]   ;;  %s4193_s7 = inlined_call_operand.vmem [shape: f32[32,16], index: 7, kind: input, shape index: {}]   ;;  %s4194_s8 = inlined_call_operand.vmem [shape: f32[1,16], index: 8, kind: input, shape index: {}]   ;;  %s4195_s9 = inlined_call_operand.vmem [shape: f32[16,16], index: 9, kind: input, shape index: {}]   ;;  %s4196_s10 = inlined_call_operand.vmem [shape: f32[32,16], index: 10, kind: input, shape index: {}]   ;;  %s4197_s11 = inlined_call_operand.vmem [shape: f32[1,16], index: 11, kind: input, shape index: {}]   ;;  %s4198_s12 = inlined_call_operand.vmem [shape: f32[16,8], index: 12, kind: input, shape index: {}]   ;;  %s4199_s13 = inlined_call_operand.vmem [shape: f32[1,8], index: 13, kind: input, shape index: {}]   ;;  %s4200_s14 = inlined_call_operand.vmem [shape: f32[1,8], index: 14, kind: input, shape index: {}]   ;;  %s4201_s15 = inlined_call_operand.vmem [shape: f32[1,32], index: 15, kind: input, shape index: {}]   ;;  %s4202_s16 = inlined_call_operand.<no memory space> [shape: f32[1,1], index: 16, kind: input, shape index: {}]   ;;  %s4203_s17 = inlined_call_operand.vmem [shape: f32[2,1,8], index: 17, kind: output, shape index: {}]  }
   0x1   :  { %4256 = sst [smem:[#allocation9_spill]] %s4186_s0  ;;  %v22_v0 = vstv %s4202_s16 }
   0x2   :  { %4257 = sst [smem:[#allocation10_spill]] %s4187_s1  ;;  %23 = vst [vmem:[#allocation2] sm:$0x1] %v22_v0 }
   0x3 LB: > { %s3172_s27 = sadd.s32 4294967295, %s3061_s26   ;;  %p2656_p0 = scmp.ge.s32.totalorder %s3061_s26, 1  ;;  %s3061_s26 = sphi %s3166_s26, %s29_s26  }
   0x4   : > { %p530_p1 = scmp.lt.s32.totalorder %s3061_s26, 3 }
   0x6   : > { %p531_p2 = pnand %p2656_p0, %p530_p1 }
   0x8   : > { %534 = sbr.rel (%p531_p2) target bundleno = 1342 (0x53e), region = 88 }
   0xd   : > { %s2657_s28 = sshll.u32 %s3172_s27, 3  ;;  %v3063_v1 = vmov 2   ;;  %v3064_v2 = vmov 0   ;;  %s4258_s30 = sld [smem:[#allocation9_spill]]  ;;  %v3065_v15 = vmov 1   ;;  %v3066_v20 = vmov 5  }
   0xe   : > { %2871 = vset.pattern.permute.xlu1 %v3063_v1  ;;  %2859 = vset.pattern.permute.xlu0 %v3064_v2  ;;  %p599_p3 = scmp.lt.s32.totalorder %s2657_s28, 15  ;;  %v3067_v21 = vmov 4   ;;  %v3068_v22 = vmov 6   ;;  %v3069_v23 = vmov 3   ;;  %v3070_v24 = vmov 7   ;;  %v1300_v25 = vld [vmem:[%s4191_s5 + $0x8] sm:$0xff] }
   0xf   : > { %2770 = vmatprep.subr.mxu0 %v1300_v25  ;;  %v1299_v26 = vld [vmem:[%s4191_s5] sm:$0xff]  ;;  %v699_v36 = vlaneseq  ;;  %s4259_s24 = sld [smem:[#allocation10_spill]]  ;;  %vm1308_vm0 = vcmask 130048   ;;  %p610_p4 = scmp.lt.s32.totalorder %s3172_s27, 1  ;;  %vm1833_vm1 = vcmask 261120   ;;  %vm3072_vm2 = vmmov 0  }
  0x10   : > { %s4384_s28 = smov (!%p599_p3, %s2657_s28), 15  ;;  %2771 = vmatpush3.msra.mxu0 %v1300_v25  ;;  %vm2200_vm3 = vcmask 1041409   ;;  %vm2203_vm4 = vcmask 1042434   ;;  %vm2206_vm5 = vcmask 1043459   ;;  %vm2209_vm6 = vcmask 1044484  }
  0x11   : > { %s2658_s16 = sshll.u32 %s4384_s28, 2  ;;  %2772 = vmatprep.subr.mxu0 %v1299_v26  ;;  %v3244_v38 = vshrl.u32 %v699_v36, 7  ;;  %s2663_s21 = sshll.u32 %s4384_s28, 3  ;;  %vm2212_vm7 = vcmask 1045509   ;;  %vm2215_vm8 = vcmask 1046534   ;;  %vm2218_vm9 = vcmask 1047559  }
  0x12   : > { %2773 = vmatpush3.msra.mxu0 %v1299_v26  ;;  %s4386_s27 = smov (!%p610_p4, %s3172_s27), 1  ;;  %vm2461_vm10 = vcmask 64512   ;;  %vm2555_vm11 = vcmask 57344  }
  0x13   : > { %s602_s18 = scalar_lea.vmem %s4258_s30, %s2658_s16  ;;  %v3256_v44 = vsub.s32 2, %v3244_v38  ;;  %v3259_v45 = vsub.s32 0, %v3244_v38  ;;  %v3263_v47 = vsub.s32 1, %v3244_v38  ;;  %s2661_s28 = sshll.u32 %s4386_s27, 3 }
  0x14   : > { %v2696_v3 = vld [vmem:[%s602_s18] sm:$0xff]   ;;  %v2727_v4 = vld [vmem:[%s602_s18 + $0x8] sm:$0xff]   ;;  %v2728_v10 = vld [vmem:[%s602_s18 + $0x10] sm:$0xff]   ;;  %s623_s29 = scalar_lea.vmem %s4190_s4, %s2661_s28  ;;  %s613_s23 = scalar_lea.vmem %s4188_s2, %s2661_s28 }
  0x15   : > { %v2697_v5 = vunpack.c.l.bf16 %v2696_v3  ;;  %v2698_v6 = vunpack.c.h.bf16 %v2696_v3  ;;  %v2701_v7 = vunpack.c.l.bf16 %v2727_v4  ;;  %v2702_v8 = vunpack.c.h.bf16 %v2727_v4  ;;  %v2729_v12 = vld [vmem:[%s602_s18 + $0x18] sm:$0xff]   ;;  %s3240_s25 = scalar_lea.vmem %s4259_s24, %s2658_s16  ;;  %s618_s24 = scalar_lea.vmem %s4189_s3, %s2663_s21 }
  0x16   : > { %v2705_v13 = vunpack.c.l.bf16 %v2728_v10  ;;  %v2706_v14 = vunpack.c.h.bf16 %v2728_v10  ;;  %v2709_v16 = vunpack.c.l.bf16 %v2729_v12  ;;  %v2710_v17 = vunpack.c.h.bf16 %v2729_v12  ;;  %v2712_v39 = vld [vmem:[%s3240_s25] sm:$0xff]   ;;  %v2730_v46 = vld [vmem:[%s3240_s25 + $0x8] sm:$0xff]   ;;  %v2731_v48 = vld [vmem:[%s3240_s25 + $0x10] sm:$0xff]   ;;  %s626_s20 = scalar_lea.vmem %s4203_s17, %s4386_s27 }
  0x17   : > { %v2872_v9 = vpack.i.bf16 %v2698_v6, %v2697_v5  ;;  %v3186_v11 = vpack.i.bf16 %v2702_v8, %v2701_v7  ;;  %v3251_v42 = vunpack.c.l.bf16 %v2712_v39  ;;  %v3253_v43 = vunpack.c.h.bf16 %v2712_v39  ;;  %v2732_v25 = vld [vmem:[%s3240_s25 + $0x18] sm:$0xff]  }
  0x18   : > { %v3002_v18 = vpack.i.bf16 %v2706_v14, %v2705_v13  ;;  %v3190_v19 = vpack.i.bf16 %v2710_v17, %v2709_v16  ;;  %v3266_v49 = vunpack.c.l.bf16 %v2730_v46  ;;  %v3268_v50 = vunpack.c.h.bf16 %v2730_v46 }
  0x19   : > { %2873 = vperm.xlu1 %2871, %v2872_v9   ;;  %2861 = vperm.xlu0 %2859, %v2872_v9   ;;  %v854_v52 = vrot.slane %v3251_v42, %v3256_v44  ;;  %v858_v53 = vrot.slane %v3253_v43, %v3256_v44  ;;  %v702_v54 = vrot.slane %v3251_v42, %v3259_v45  ;;  %v3286_v59 = vunpack.c.l.bf16 %v2731_v48 }
  0x1a   : > { %v706_v55 = vrot.slane %v3253_v43, %v3259_v45  ;;  %v774_v57 = vrot.slane %v3251_v42, %v3263_v47  ;;  %v778_v58 = vrot.slane %v3253_v43, %v3263_v47  ;;  %v3288_v60 = vunpack.c.h.bf16 %v2731_v48 }
  0x1b   : > { %v3299_v3 = vsub.s32 4, %v3244_v38  ;;  %v3302_v4 = vsub.s32 3, %v3244_v38  ;;  %v782_v5 = vrot.slane %v3266_v49, %v3263_v47  ;;  %v786_v6 = vrot.slane %v3268_v50, %v3263_v47 }
  0x1c   : > { %v866_v8 = vrot.slane %v3268_v50, %v3256_v44  ;;  %v722_v10 = vrot.slane %v3288_v60, %v3259_v45  ;;  %v3320_v12 = vsub.s32 6, %v3244_v38 }
  0x1d   : > { %2877 = vset.pattern.permute.xlu1 %v3064_v2  ;;  %2865 = vset.pattern.permute.xlu0 %v3065_v15 }
  0x1e   : > { %2879 = vperm.xlu1 %2877, %v3186_v11   ;;  %2867 = vperm.xlu0 %2865, %v2872_v9  }
  0x22   : > { %2883 = vset.pattern.permute.xlu1 %v3065_v15  ;;  %2901 = vset.pattern.permute.xlu0 %v3064_v2 }
  0x23   : > { %2885 = vperm.xlu1 %2883, %v3186_v11   ;;  %2903 = vperm.xlu0 %2901, %v3002_v18  }
  0x27   : > { %2889 = vset.pattern.permute.xlu1 %v3063_v1  ;;  %2919 = vset.pattern.permute.xlu0 %v3066_v20 }
  0x28   : > { %2891 = vperm.xlu1 %2889, %v3186_v11   ;;  %2921 = vperm.xlu0 %2919, %v2872_v9  }
  0x2c   : > { %2895 = vset.pattern.permute.xlu1 %v3067_v21  ;;  %2937 = vset.pattern.permute.xlu0 %v3068_v22 }
  0x2d   : > { %2897 = vperm.xlu1 %2895, %v2872_v9   ;;  %2939 = vperm.xlu0 %2937, %v2872_v9  }
  0x31   : > { %2907 = vset.pattern.permute.xlu1 %v3065_v15  ;;  %2967 = vset.pattern.permute.xlu0 %v3063_v1 }
  0x32   : > { %2909 = vperm.xlu1 %2907, %v3002_v18   ;;  %2969 = vperm.xlu0 %2967, %v3190_v19  }
  0x36   : > { %2913 = vset.pattern.permute.xlu1 %v3069_v23  ;;  %2973 = vset.pattern.permute.xlu0 %v3069_v23 }
  0x37   : > { %2915 = vperm.xlu1 %2913, %v3186_v11   ;;  %2975 = vperm.xlu0 %2973, %v2872_v9  }
  0x3b   : > { %2925 = vset.pattern.permute.xlu1 %v3063_v1  ;;  %2980 = vperm.xlu0 %2973, %v3002_v18   ;;  %v710_v1 = vrot.slane %v3266_v49, %v3259_v45 }
  0x3c   : > { %2927 = vperm.xlu1 %2925, %v3002_v18  }
  0x3f   : > { %2997 = vperm.xlu0 %2973, %v3190_v19  }
  0x40   : > { %2931 = vset.pattern.permute.xlu1 %v3067_v21 }
  0x41   : > { %2933 = vperm.xlu1 %2931, %v3186_v11  }
  0x43   : > { %3013 = vset.pattern.permute.xlu0 %v3067_v21 }
  0x44   : > { %3015 = vperm.xlu0 %3013, %v3190_v19  }
  0x45   : > { %2943 = vset.pattern.permute.xlu1 %v3064_v2 }
  0x46   : > { %2945 = vperm.xlu1 %2943, %v3190_v19  }
  0x48   : > { %3031 = vset.pattern.permute.xlu0 %v3070_v24 }
  0x49   : > { %3033 = vperm.xlu0 %3031, %v3002_v18  }
  0x4a   : > { %2949 = vset.pattern.permute.xlu1 %v3065_v15 }
  0x4b   : > { %2951 = vperm.xlu1 %2949, %v3190_v19  }
  0x4d   : > { %3049 = vset.pattern.permute.xlu0 %v3064_v2 }
  0x4f   : > { %2955 = vset.pattern.permute.xlu1 %v3066_v20 }
  0x50   : > { %2957 = vperm.xlu1 %2955, %v3186_v11  }
  0x54   : > { %2961 = vset.pattern.permute.xlu1 %v3070_v24 }
  0x55   : > { %2963 = vperm.xlu1 %2961, %v2872_v9   ;;  %v718_v9 = vrot.slane %v3286_v59, %v3259_v45 }
  0x59   : > { %2984 = vset.pattern.permute.xlu1 %v3067_v21  ;;  %v934_v21 = vrot.slane %v3251_v42, %v3302_v4 }
  0x5a   : > { %2986 = vperm.xlu1 %2984, %v3002_v18  }
  0x5e   : > { %2990 = vset.pattern.permute.xlu1 %v3068_v22 }
  0x5f   : > { %2992 = vperm.xlu1 %2990, %v3186_v11  }
  0x63   : > { %3001 = vset.pattern.permute.xlu1 %v3066_v20 }
  0x64   : > { %3003 = vperm.xlu1 %3001, %v3002_v18  }
  0x68   : > { %3007 = vset.pattern.permute.xlu1 %v3070_v24 }
  0x69   : > { %3009 = vperm.xlu1 %3007, %v3186_v11   ;;  %v3317_v11 = vsub.s32 5, %v3244_v38 }
  0x6b   : > { %v1094_v39 = vrot.slane %v3251_v42, %v3317_v11  ;;  %v1098_v46 = vrot.slane %v3253_v43, %v3317_v11 }
  0x6d   : > { %3019 = vset.pattern.permute.xlu1 %v3068_v22 }
  0x6e   : > { %3021 = vperm.xlu1 %3019, %v3002_v18  }
  0x72   : > { %3025 = vset.pattern.permute.xlu1 %v3066_v20  ;;  %v1018_v20 = vrot.slane %v3253_v43, %v3299_v3 }
  0x73   : > { %3027 = vperm.xlu1 %3025, %v3190_v19  }
  0x77   : > { %3037 = vset.pattern.permute.xlu1 %v3068_v22  ;;  %v938_v22 = vrot.slane %v3253_v43, %v3302_v4 }
  0x78   : > { %3039 = vperm.xlu1 %3037, %v3190_v19  }
  0x7c   : > { %3043 = vset.pattern.permute.xlu1 %v3070_v24 }
  0x7d   : > { %3045 = vperm.xlu1 %3043, %v3190_v19   ;;  %v1014_v19 = vrot.slane %v3251_v42, %v3299_v3 }
  0x81   : > { %3050 = vset.pattern.permute.xlu1 %v3064_v2  ;;  %v714_v2 = vrot.slane %v3268_v50, %v3259_v45 }
  0x94   : > { %v3217_v27 = vpop.permute.xlu1 %2873  ;;  %v3221_v29 = vpop.permute.xlu0 %2861 }
  0x95   : > { %v4205_v61 = vunpack.i.h.bf16 %v3221_v29  ;;  %v4207_v62 = vunpack.i.l.bf16 %v3221_v29  ;;  %v4208_v23 = vunpack.i.h.bf16 %v3217_v27  ;;  %v4211_v24 = vunpack.i.l.bf16 %v3217_v27 }
  0x97   : > { %v732_v15 = vmul.f32 %v4205_v61, %v706_v55  ;;  %v731_v16 = vmul.f32 %v4207_v62, %v702_v54  ;;  %v3363_v62 = vunpack.c.h.bf16 %v2732_v25 }
  0x99   : > { %v3219_v28 = vpop.permute.xlu1 %2879  ;;  %v3225_v31 = vpop.permute.xlu0 %2867 }
  0x9a   : > { %v4204_v63 = vunpack.i.h.bf16 %v3225_v31  ;;  %v4206_v0 = vunpack.i.l.bf16 %v3225_v31 }
  0x9c   : > { %v804_v17 = vmul.f32 %v4204_v63, %v778_v58  ;;  %v803_v18 = vmul.f32 %v4206_v0, %v774_v57  ;;  %v1174_v58 = vrot.slane %v3251_v42, %v3320_v12  ;;  %v1178_v63 = vrot.slane %v3253_v43, %v3320_v12 }
  0x9d   : > { %v3361_v0 = vunpack.c.l.bf16 %v2732_v25 }
  0x9e   : > { %v3223_v30 = vpop.permute.xlu1 %2885  ;;  %v3229_v33 = vpop.permute.xlu0 %2903  ;;  %v811_v55 = vadd.f32 %v803_v18, %v731_v16  ;;  %v812_v57 = vadd.f32 %v804_v17, %v732_v15  ;;  %v884_v15 = vmul.f32 %v4208_v23, %v858_v53  ;;  %v883_v16 = vmul.f32 %v4211_v24, %v854_v52 }
  0x9f   : > { %v3406_v24 = vsub.s32 7, %v3244_v38 }
  0xa3   : > { %v3227_v32 = vpop.permute.xlu1 %2891  ;;  %v3233_v35 = vpop.permute.xlu0 %2921 }
  0xa8   : > { %v3231_v34 = vpop.permute.xlu1 %2897  ;;  %v3247_v40 = vpop.permute.xlu0 %2939 }
  0xa9   : > { %v4212_v52 = vunpack.i.h.bf16 %v3231_v34  ;;  %v4213_v23 = vunpack.i.l.bf16 %v3231_v34 }
  0xad   : > { %v3242_v37 = vpop.permute.xlu1 %2909  ;;  %v3270_v51 = vpop.permute.xlu0 %2969 }
  0xae   : > { %4260 = vst [vmem:[#allocation3_spill] sm:$0xff] %v3270_v51 }
  0xb2   : > { %v3249_v41 = vpop.permute.xlu1 %2915  ;;  %v3322_v13 = vpop.permute.xlu0 %2975 }
  0xb3   : > { %v4209_v26 = vunpack.i.h.bf16 %v3322_v13  ;;  %v4210_v36 = vunpack.i.l.bf16 %v3322_v13 }
  0xb5   : > { %v964_v17 = vmul.f32 %v4209_v26, %v938_v22  ;;  %v963_v18 = vmul.f32 %v4210_v36, %v934_v21  ;;  %v891_v22 = vadd.f32 %v883_v16, %v811_v55  ;;  %v892_v26 = vadd.f32 %v884_v15, %v812_v57 }
  0xb6   : > { %v4214_v21 = vunpack.i.h.bf16 %v3233_v35  ;;  %v4215_v36 = vunpack.i.l.bf16 %v3233_v35 }
  0xb7   : > { %v3280_v56 = vpop.permute.xlu1 %2927  ;;  %v971_v48 = vadd.f32 %v963_v18, %v891_v22  ;;  %v972_v53 = vadd.f32 %v964_v17, %v892_v26  ;;  %v1044_v26 = vmul.f32 %v4212_v52, %v1018_v20  ;;  %v1043_v17 = vmul.f32 %v4213_v23, %v1014_v19 }
  0xb8   : > { %4261 = vst [vmem:[#allocation4_spill] sm:$0xff] %v3280_v56  ;;  %v1124_v57 = vmul.f32 %v4214_v21, %v1098_v46  ;;  %v1123_v15 = vmul.f32 %v4215_v36, %v1094_v39  ;;  %v4216_v19 = vunpack.i.h.bf16 %v3247_v40  ;;  %v4217_v52 = vunpack.i.l.bf16 %v3247_v40 }
  0xb9   : > { %v1052_v23 = vadd.f32 %v1044_v26, %v972_v53  ;;  %v1051_v22 = vadd.f32 %v1043_v17, %v971_v48  ;;  %v1258_v39 = vrot.slane %v3253_v43, %v3406_v24  ;;  %v1254_v36 = vrot.slane %v3251_v42, %v3406_v24 }
  0xba   : > { %v1204_v21 = vmul.f32 %v4216_v19, %v1178_v63  ;;  %v1203_v38 = vmul.f32 %v4217_v52, %v1174_v58  ;;  %v4218_v48 = vunpack.i.h.bf16 %v3219_v28  ;;  %v4219_v26 = vunpack.i.l.bf16 %v3219_v28  ;;  %v3470_v52 = vpop.permute.xlu0 %2980 }
  0xbb   : > { %v1132_v18 = vadd.f32 %v1124_v57, %v1052_v23  ;;  %v1131_v53 = vadd.f32 %v1123_v15, %v1051_v22  ;;  %v4224_v42 = vunpack.i.h.bf16 %v3223_v30  ;;  %v4226_v63 = vunpack.i.l.bf16 %v3223_v30  ;;  %4263 = vst [vmem:[#allocation6_spill] sm:$0xff] %v3470_v52 }
  0xbc   : > { %v3324_v14 = vpop.permute.xlu1 %2933  ;;  %v4221_v57 = vunpack.i.h.bf16 %v3229_v33  ;;  %v4222_v15 = vunpack.i.l.bf16 %v3229_v33  ;;  %v4223_v22 = vunpack.i.h.bf16 %v3227_v32  ;;  %v4225_v19 = vunpack.i.l.bf16 %v3227_v32 }
  0xbd   : > { %v1212_v17 = vadd.f32 %v1204_v21, %v1132_v18  ;;  %v1211_v46 = vadd.f32 %v1203_v38, %v1131_v53  ;;  %v734_v7 = vmul.f32 %v4218_v48, %v714_v2  ;;  %v733_v55 = vmul.f32 %v4219_v26, %v710_v1 }
  0xbe   : > { %v805_v2 = vmul.f32 %v4226_v63, %v782_v5  ;;  %v4228_v53 = vunpack.i.h.bf16 %v3242_v37  ;;  %v4229_v48 = vunpack.i.l.bf16 %v3242_v37  ;;  %v4230_v26 = vunpack.i.h.bf16 %v3249_v41 }
  0xbf   : > { %v735_v5 = vmul.f32 %v4222_v15, %v718_v9  ;;  %v4232_v9 = vunpack.i.l.bf16 %v3270_v51  ;;  %v4235_v15 = vunpack.i.l.bf16 %v3280_v56  ;;  %v4267_v63 = vrot.slane %v3286_v59, %v3263_v47 }
  0xc1   : > { %v3359_v61 = vpop.permute.xlu1 %2945 }
  0xc6   : > { %v3393_v54 = vpop.permute.xlu1 %2951 }
  0xc7   : > { %4262 = vst [vmem:[#allocation5_spill] sm:$0xff] %v3393_v54 }
  0xcb   : > { %v3426_v16 = vpop.permute.xlu1 %2957 }
  0xd0   : > { %v3456_v20 = vpop.permute.xlu1 %2963 }
  0xd1   : > { %v4220_v58 = vunpack.i.h.bf16 %v3456_v20  ;;  %v4227_v23 = vunpack.i.l.bf16 %v3456_v20 }
  0xd3   : > { %v1284_v43 = vmul.f32 %v4220_v58, %v1258_v39  ;;  %v1283_v25 = vmul.f32 %v4227_v23, %v1254_v36  ;;  %v806_v36 = vmul.f32 %v4224_v42, %v786_v6  ;;  %v4234_v58 = vunpack.i.l.bf16 %v3249_v41 }
  0xd4   : > { %v736_v6 = vmul.f32 %v4221_v57, %v722_v10  ;;  %v4231_v10 = vunpack.i.h.bf16 %v3270_v51  ;;  %v4233_v57 = vunpack.i.h.bf16 %v3280_v56  ;;  %v4236_v42 = vunpack.i.h.bf16 %v3324_v14 }
  0xd5   : > { %v1292_v18 = vadd.f32 %v1284_v43, %v1212_v17  ;;  %v3500_v1 = vpop.permute.xlu1 %2986  ;;  %v1291_v38 = vadd.f32 %v1283_v25, %v1211_v46  ;;  %v886_v25 = vmul.f32 %v4223_v22, %v866_v8  ;;  %v4265_v46 = vrot.slane %v3266_v49, %v3256_v44  ;;  %v3526_v17 = vpop.permute.xlu0 %2997 }
  0xd6   : > { %4264 = vst [vmem:[#allocation7_spill] sm:$0xff] %v3500_v1  ;;  %v813_v8 = vadd.f32 %v805_v2, %v733_v55  ;;  %v814_v22 = vadd.f32 %v806_v36, %v734_v7  ;;  %v807_v23 = vmul.f32 %v4229_v48, %v4267_v63  ;;  %v4268_v55 = vrot.slane %v3268_v50, %v3302_v4 }
  0xd7   : > { %v885_v43 = vmul.f32 %v4225_v19, %v4265_v46  ;;  %2774 = vmatprep.mubr.msk.f32.mxu0 %vm1308_vm0, %v1291_v38  ;;  %v4239_v46 = vunpack.i.l.bf16 %v3324_v14  ;;  %v4266_v19 = vrot.slane %v3288_v60, %v3263_v47  ;;  %v4269_v36 = vrot.slane %v3266_v49, %v3302_v4 }
  0xd8   : > { %2775 = vmatmul.mubr.msk.f32.vlgmr.msra.gmra.mxu0 %vm1308_vm0, %v1292_v18  ;;  %v966_v7 = vmul.f32 %v4230_v26, %v4268_v55  ;;  %v4270_v48 = vrot.slane %v3363_v62, %v3256_v44  ;;  %v4271_v26 = vrot.slane %v3361_v0, %v3256_v44  ;;  %v815_v21 = vadd.f32 %v807_v23, %v735_v5 }
  0xd9   : > { %v808_v38 = vmul.f32 %v4228_v53, %v4266_v19  ;;  %v965_v2 = vmul.f32 %v4234_v58, %v4269_v36  ;;  %v893_v19 = vadd.f32 %v885_v43, %v813_v8  ;;  %v894_v53 = vadd.f32 %v886_v25, %v814_v22  ;;  %v3596_v58 = vpop.permute.xlu0 %3015 }
  0xda   : > { %v3556_v18 = vpop.permute.xlu1 %2992  ;;  %v3565_v55 = vmul.f32 %v4231_v10, %v4270_v48  ;;  %v3572_v36 = vmul.f32 %v4232_v9, %v4271_v26  ;;  %v4272_v22 = vrot.slane %v3288_v60, %v3256_v44  ;;  %v4273_v43 = vrot.slane %v3286_v59, %v3256_v44 }
  0xdb   : > { %v4274_v8 = vrot.slane %v3268_v50, %v3299_v3  ;;  %v4275_v26 = vrot.slane %v3266_v49, %v3299_v3  ;;  %v974_v63 = vadd.f32 %v966_v7, %v894_v53  ;;  %v4276_v39 = vrot.slane %v3288_v60, %v3302_v4 }
  0xdc   : > { %v888_v25 = vmul.f32 %v4233_v57, %v4272_v22  ;;  %v887_v48 = vmul.f32 %v4235_v15, %v4273_v43  ;;  %v816_v43 = vadd.f32 %v808_v38, %v736_v6  ;;  %v973_v15 = vadd.f32 %v965_v2, %v893_v19 }
  0xdd   : > { %v1046_v10 = vmul.f32 %v4236_v42, %v4274_v8  ;;  %v1045_v9 = vmul.f32 %v4239_v46, %v4275_v26  ;;  %v4277_v8 = vunpack.i.h.bf16 %v3470_v52  ;;  %v4278_v51 = vrot.slane %v3286_v59, %v3302_v4 }
  0xde   : > { %v4279_v26 = vunpack.i.l.bf16 %v3470_v52  ;;  %v4240_v57 = vunpack.i.h.bf16 %v3556_v18  ;;  %v895_v6 = vadd.f32 %v887_v48, %v815_v21  ;;  %v896_v53 = vadd.f32 %v888_v25, %v816_v43  ;;  %v3624_v21 = vpop.permute.xlu0 %3033 }
  0xdf   : > { %v968_v42 = vmul.f32 %v4277_v8, %v4276_v39  ;;  %v3610_v23 = vpop.permute.xlu1 %3003  ;;  %v1053_v7 = vadd.f32 %v1045_v9, %v973_v15  ;;  %v1054_v39 = vadd.f32 %v1046_v10, %v974_v63  ;;  %v4281_v2 = vrot.slane %v3268_v50, %v3317_v11 }
  0xe0   : > { %v967_v46 = vmul.f32 %v4279_v26, %v4278_v51  ;;  %4280 = vst [vmem:[#allocation8_spill] sm:$0xff] %v3610_v23  ;;  %v4282_v19 = vunpack.i.h.bf16 %v3426_v16  ;;  %v4283_v8 = vrot.slane %v3266_v49, %v3317_v11  ;;  %v4284_v26 = vunpack.i.l.bf16 %v3426_v16 }
  0xe1   : > { %v4285_v43 = vrot.slane %v3268_v50, %v3320_v12  ;;  %v4288_v25 = vrot.slane %v3363_v62, %v3263_v47  ;;  %v4290_v5 = vrot.slane %v3361_v0, %v3263_v47  ;;  %v4291_v38 = vunpack.i.l.bf16 %v3393_v54 }
  0xe2   : > { %v1126_v51 = vmul.f32 %v4282_v19, %v4281_v2  ;;  %v1125_v22 = vmul.f32 %v4284_v26, %v4283_v8  ;;  %v4286_v19 = vrot.slane %v3266_v49, %v3320_v12  ;;  %v4287_v8 = vunpack.i.l.bf16 %v3556_v18 }
  0xe3   : > { %v1206_v2 = vmul.f32 %v4240_v57, %v4285_v43  ;;  %v809_v63 = vmul.f32 %v4291_v38, %v4290_v5  ;;  %v4295_v9 = vunpack.i.l.bf16 %v3500_v1  ;;  %v4298_v38 = vrot.slane %v3266_v49, %v3406_v24 }
  0xe4   : > { %v1205_v26 = vmul.f32 %v4287_v8, %v4286_v19  ;;  %v3644_v10 = vpop.permute.xlu1 %3009  ;;  %v1133_v15 = vadd.f32 %v1125_v22, %v1053_v7  ;;  %v1134_v48 = vadd.f32 %v1126_v51, %v1054_v39  ;;  %v4289_v19 = vunpack.i.h.bf16 %v3393_v54 }
  0xe5   : > { %v4292_v22 = vrot.slane %v3288_v60, %v3299_v3  ;;  %v4293_v7 = vunpack.i.h.bf16 %v3500_v1  ;;  %v4294_v51 = vrot.slane %v3286_v59, %v3299_v3  ;;  %v4297_v54 = vunpack.i.h.bf16 %v3644_v10 }
  0xe6   : > { %v810_v8 = vmul.f32 %v4289_v19, %v4288_v25  ;;  %v1213_v43 = vadd.f32 %v1205_v26, %v1133_v15  ;;  %v1214_v25 = vadd.f32 %v1206_v2, %v1134_v48  ;;  %v4296_v19 = vrot.slane %v3268_v50, %v3406_v24 }
  0xe7   : > { %v1048_v39 = vmul.f32 %v4293_v7, %v4292_v22  ;;  %v1047_v57 = vmul.f32 %v4295_v9, %v4294_v51  ;;  %v4299_v52 = vunpack.i.l.bf16 %v3644_v10  ;;  %v975_v7 = vadd.f32 %v967_v46, %v895_v6 }
  0xe8   : > { %v1286_v5 = vmul.f32 %v4297_v54, %v4296_v19  ;;  %v976_v56 = vadd.f32 %v968_v42, %v896_v53  ;;  %v4300_v1 = vrot.slane %v3288_v60, %v3317_v11  ;;  %v4301_v15 = vunpack.i.h.bf16 %v3610_v23 }
  0xe9   : > { %v1285_v22 = vmul.f32 %v4299_v52, %v4298_v38  ;;  %v4302_v50 = vrot.slane %v3286_v59, %v3317_v11  ;;  %v4303_v9 = vunpack.i.l.bf16 %v3610_v23  ;;  %v4304_v49 = vrot.slane %v3363_v62, %v3259_v45  ;;  %v3700_v26 = vpop.permute.xlu1 %3021 }
  0xea   : > { %v1128_v48 = vmul.f32 %v4301_v15, %v4300_v1  ;;  %v4305_v2 = vunpack.i.h.bf16 %v3359_v61  ;;  %v4306_v42 = vrot.slane %v3361_v0, %v3259_v45  ;;  %v4307_v46 = vunpack.i.l.bf16 %v3359_v61 }
  0xeb   : > { %v1127_v54 = vmul.f32 %v4303_v9, %v4302_v50  ;;  %v1293_v53 = vadd.f32 %v1285_v22, %v1213_v43  ;;  %v1294_v1 = vadd.f32 %v1286_v5, %v1214_v25  ;;  %v1055_v51 = vadd.f32 %v1047_v57, %v975_v7 }
  0xec   : > { %v738_v52 = vmul.f32 %v4305_v2, %v4304_v49  ;;  %v737_v6 = vmul.f32 %v4307_v46, %v4306_v42  ;;  %v1056_v19 = vadd.f32 %v1048_v39, %v976_v56  ;;  %v3024_v38 = vunpack.i.h.bf16 %v3700_v26 }
  0xed   : > { %v3023_v15 = vunpack.i.l.bf16 %v3700_v26  ;;  %v4308_v49 = vrot.slane %v3288_v60, %v3406_v24  ;;  %v4309_v2 = vunpack.i.h.bf16 %v3624_v21  ;;  %v4310_v43 = vrot.slane %v3286_v59, %v3406_v24  ;;  %2777 = vmatprep.mubr.msk.f32.mxu0 %vm1308_vm0, %v1293_v53 }
  0xee   : > { %v817_v50 = vadd.f32 %v809_v63, %v737_v6  ;;  %v818_v9 = vadd.f32 %v810_v8, %v738_v52  ;;  %v4311_v25 = vunpack.i.l.bf16 %v3624_v21  ;;  %v1135_v56 = vadd.f32 %v1127_v54, %v1055_v51  ;;  %2778 = vmatmul.mubr.msk.f32.gmra.mxu0 %vm1308_vm0, %v1294_v1  ;;  %v3740_v1 = vpop.permute.xlu1 %3027 }
  0xef   : > { %v1288_v23 = vmul.f32 %v4309_v2, %v4308_v49  ;;  %v1136_v57 = vadd.f32 %v1128_v48, %v1056_v19  ;;  %v4312_v63 = vrot.slane %v3288_v60, %v3320_v12  ;;  %v4313_v39 = vrot.slane %v3286_v59, %v3320_v12 }
  0xf0   : > { %v1287_v5 = vmul.f32 %v4311_v25, %v4310_v43  ;;  %v1038_v7 = vrot.slane %v3361_v0, %v3299_v3  ;;  %v1042_v48 = vrot.slane %v3363_v62, %v3299_v3  ;;  %v4314_v60 = vrot.slane %v3363_v62, %v3302_v4 }
  0xf1   : > { %v1208_v8 = vmul.f32 %v3024_v38, %v4312_v63  ;;  %v1207_v22 = vmul.f32 %v3023_v15, %v4313_v39  ;;  %v4315_v54 = vunpack.i.h.bf16 %v3526_v17  ;;  %v4316_v59 = vrot.slane %v3361_v0, %v3302_v4 }
  0xf2   : > { %v4317_v42 = vunpack.i.l.bf16 %v3526_v17  ;;  %v897_v51 = vadd.f32 %v3572_v36, %v817_v50  ;;  %v898_v19 = vadd.f32 %v3565_v55, %v818_v9  ;;  %v4255_v49 = vunpack.i.h.bf16 %v3596_v58 }
  0xf3   : > { %v970_v52 = vmul.f32 %v4315_v54, %v4314_v60  ;;  %v1215_v6 = vadd.f32 %v1207_v22, %v1135_v56  ;;  %v1216_v53 = vadd.f32 %v1208_v8, %v1136_v57  ;;  %v3017_v2 = vunpack.i.l.bf16 %v3596_v58  ;;  %v3761_v8 = vpop.permute.xlu1 %3039 }
  0xf4   : > { %v969_v46 = vmul.f32 %v4317_v42, %v4316_v59  ;;  %v1118_v63 = vrot.slane %v3361_v0, %v3317_v11  ;;  %v1122_v39 = vrot.slane %v3363_v62, %v3317_v11  ;;  %v4253_v56 = vunpack.i.h.bf16 %v3740_v1 }
  0xf5   : > { %v1295_v43 = vadd.f32 %v1287_v5, %v1215_v6  ;;  %v1296_v25 = vadd.f32 %v1288_v23, %v1216_v53  ;;  %v3029_v57 = vunpack.i.l.bf16 %v3740_v1  ;;  %v1198_v55 = vrot.slane %v3361_v0, %v3320_v12 }
  0xf6   : > { %v1202_v36 = vrot.slane %v3363_v62, %v3320_v12  ;;  %v977_v50 = vadd.f32 %v969_v46, %v897_v51  ;;  %v978_v23 = vadd.f32 %v970_v52, %v898_v19  ;;  %v1050_v9 = vmul.f32 %v4255_v49, %v1042_v48 }
  0xf7   : > { %2780 = vmatprep.mubr.msk.f32.mxu0 %vm1308_vm0, %v1295_v43  ;;  %v1049_v5 = vmul.f32 %v3017_v2, %v1038_v7  ;;  %v4252_v22 = vunpack.i.h.bf16 %v3761_v8  ;;  %v3041_v60 = vunpack.i.l.bf16 %v3761_v8  ;;  %v1130_v54 = vmul.f32 %v4253_v56, %v1122_v39 }
  0xf8   : > { %2781 = vmatmul.mubr.msk.f32.gmra.mxu0 %vm1308_vm0, %v1296_v25  ;;  %v1129_v52 = vmul.f32 %v3029_v57, %v1118_v63  ;;  %v1278_v48 = vrot.slane %v3361_v0, %v3406_v24  ;;  %v1282_v7 = vrot.slane %v3363_v62, %v3406_v24  ;;  %v1058_v42 = vadd.f32 %v1050_v9, %v978_v23  ;;  %v3778_v53 = vpop.permute.xlu1 %3045  ;;  %v1824_v23 = vld [vmem:[%s4193_s7 + $0x10] sm:$0xff]  ;;  %v1823_v9 = vld [vmem:[%s4193_s7 + $0x8] sm:$0xff] }
  0xf9   : > { %v1057_v59 = vadd.f32 %v1049_v5, %v977_v50  ;;  %v1210_v46 = vmul.f32 %v4252_v22, %v1202_v36  ;;  %v1209_v6 = vmul.f32 %v3041_v60, %v1198_v55  ;;  %v4251_v43 = vunpack.i.h.bf16 %v3778_v53  ;;  %v1825_v55 = vld [vmem:[%s4193_s7 + $0x18] sm:$0xff]  ;;  %v1822_v5 = vld [vmem:[%s4193_s7] sm:$0xff] }
  0xfa   : > { %v1138_v19 = vadd.f32 %v1130_v54, %v1058_v42  ;;  %v4254_v25 = vunpack.i.l.bf16 %v3778_v53  ;;  %2786 = vmatprep.subr.mxu1 %v1825_v55  ;;  %v1973_v54 = vld [vmem:[%s618_s24 + $0x10] sm:$0xff]  ;;  %v1976_v42 = vld [vmem:[%s618_s24 + $0x28] sm:$0xff]  ;;  %v4323_v56 = vunpack.i.l.bf16 %v3322_v13  ;;  %v4373_v26 = vunpack.i.h.bf16 %v3624_v21 }
  0xfb   : > { %v1137_v51 = vadd.f32 %v1129_v52, %v1057_v59  ;;  %v1290_v62 = vmul.f32 %v4251_v43, %v1282_v7  ;;  %2787 = vmatpush3.msra.mxu1 %v1825_v55  ;;  %v1972_v52 = vld [vmem:[%s618_s24 + $0x8] sm:$0xff]  ;;  %1991 = vperm.xlu1 %3050, %v1973_v54   ;;  %v1974_v7 = vld [vmem:[%s618_s24 + $0x18] sm:$0xff]  ;;  %v1975_v59 = vld [vmem:[%s618_s24 + $0x20] sm:$0xff] }
  0xfc   : > { %v1218_v63 = vadd.f32 %v1210_v46, %v1138_v19  ;;  %v1289_v39 = vmul.f32 %v4254_v25, %v1278_v48  ;;  %2788 = vmatprep.subr.mxu1 %v1824_v23  ;;  %1986 = vperm.xlu0 %3049, %v1972_v52   ;;  %v1971_v48 = vld [vmem:[%s618_s24] sm:$0xff]  ;;  %v1977_v46 = vld [vmem:[%s618_s24 + $0x30] sm:$0xff] }
  0xfd   : > { %v1217_v0 = vadd.f32 %v1209_v6, %v1137_v51  ;;  %2789 = vmatpush3.msra.mxu1 %v1824_v23  ;;  %v1978_v6 = vld [vmem:[%s618_s24 + $0x38] sm:$0xff]  ;;  %v2083_v51 = vld [vmem:[%s623_s29] sm:$0xff] }
  0xfe   : > { %v1298_v50 = vadd.f32 %v1290_v62, %v1218_v63  ;;  %2790 = vmatprep.subr.mxu1 %v1823_v9  ;;  %v2538_v19 = vld [vmem:[#allocation2] sm:$0x1] }
  0xff   : > { %v1297_v36 = vadd.f32 %v1289_v39, %v1217_v0  ;;  %2791 = vmatpush3.msra.mxu1 %v1823_v9  ;;  %1981 = vperm.xlu1 %3050, %v1971_v48   ;;  %v3817_v0 = vld [vmem:[%s4192_s6] ss:$0 sm:$0xff]  ;;  %v4318_v48 = vunpack.i.l.bf16 %v3221_v29 }
 0x100   : > { %2792 = vmatprep.subr.mxu1 %v1822_v5  ;;  %1996 = vperm.xlu0 %3049, %v1974_v7  }
 0x101   : > { %2783 = vmatprep.mubr.msk.f32.mxu0 %vm1308_vm0, %v1297_v36  ;;  %2793 = vmatpush3.msra.mxu1 %v1822_v5 }
 0x102   : > { %2784 = vmatmul.mubr.msk.f32.gmra.mxu0 %vm1308_vm0, %v1298_v50 }
 0x103   : > { %2001 = vperm.xlu1 %3050, %v1975_v59   ;;  %v4319_v59 = vunpack.i.l.bf16 %v3225_v31 }
 0x104   : > { %2006 = vperm.xlu0 %3049, %v1976_v42  }
 0x107   : > { %2011 = vperm.xlu1 %3050, %v1977_v46  }
 0x108   : > { %2016 = vperm.xlu0 %3049, %v1978_v6  }
 0x10b   : > { %2086 = vperm.xlu1 %3050, %v2083_v51  }
 0x10c   : > { %2541 = vperm.xlu0 %3049, %v2538_v19  }
 0x198   : > { %v2776_v63 = vpop.f32.mrf.mxu0 }
 0x199   : > { %v1405_v62 = vadd.f32 %v2776_v63, %v3817_v0 }
 0x19a   : > { %v1399_v39 = vpop.f32.mrf.mxu0 }
 0x19b   : > { %v1439_v36 = vmax.f32 %v1405_v62, 0.0  ;;  %v1400_v50 = vadd.f32 %v3817_v0, %v1399_v39  ;;  %v4320_v62 = vunpack.i.l.bf16 %v3217_v27 }
 0x19d   : > { %v1438_v55 = vmax.f32 %v1400_v50, 0.0  ;;  %v1453_v23 = vrot.slane %v1439_v36, %v3259_v45  ;;  %v1493_v52 = vrot.slane %v1439_v36, %v3263_v47  ;;  %v1541_v6 = vrot.slane %v1439_v36, %v3256_v44 }
 0x19e   : > { %v1589_v19 = vrot.slane %v1439_v36, %v3302_v4  ;;  %v4321_v50 = vunpack.i.h.bf16 %v3221_v29  ;;  %v1685_v29 = vrot.slane %v1439_v36, %v3317_v11 }
 0x19f   : > { %v1449_v9 = vrot.slane %v1438_v55, %v3259_v45  ;;  %v1489_v5 = vrot.slane %v1438_v55, %v3263_v47  ;;  %v1537_v54 = vrot.slane %v1438_v55, %v3256_v44  ;;  %v1585_v46 = vrot.slane %v1438_v55, %v3302_v4 }
 0x1a0   : > { %v1633_v51 = vrot.slane %v1438_v55, %v3299_v3  ;;  %v1479_v43 = vmul.f32 %v4321_v50, %v1453_v23  ;;  %v4326_v50 = vunpack.i.h.bf16 %v3322_v13 }
 0x1a1   : > { %v1478_v7 = vmul.f32 %v4318_v48, %v1449_v9  ;;  %v1518_v42 = vmul.f32 %v4319_v59, %v1489_v5  ;;  %v1566_v39 = vmul.f32 %v4320_v62, %v1537_v54  ;;  %v4322_v9 = vunpack.i.h.bf16 %v3225_v31 }
 0x1a2   : > { %v1681_v5 = vrot.slane %v1438_v55, %v3317_v11  ;;  %v1637_v59 = vrot.slane %v1439_v36, %v3299_v3  ;;  %v1614_v25 = vmul.f32 %v4323_v56, %v1585_v46  ;;  %v1729_v54 = vrot.slane %v1438_v55, %v3320_v12 }
 0x1a3   : > { %v1526_v63 = vadd.f32 %v1518_v42, %v1478_v7  ;;  %v1519_v48 = vmul.f32 %v4322_v9, %v1493_v52  ;;  %v4324_v7 = vunpack.i.h.bf16 %v3217_v27  ;;  %v4325_v31 = vunpack.i.l.bf16 %v3231_v34 }
 0x1a4   : > { %v1615_v9 = vmul.f32 %v4326_v50, %v1589_v19  ;;  %v1733_v56 = vrot.slane %v1439_v36, %v3320_v12  ;;  %v4327_v27 = vunpack.i.l.bf16 %v3233_v35  ;;  %v4330_v19 = vunpack.i.h.bf16 %v3233_v35 }
 0x1a5   : > { %v1574_v22 = vadd.f32 %v1566_v39, %v1526_v63  ;;  %v1527_v49 = vadd.f32 %v1519_v48, %v1479_v43  ;;  %v1567_v42 = vmul.f32 %v4324_v7, %v1541_v6  ;;  %v1662_v52 = vmul.f32 %v4325_v31, %v1633_v51 }
 0x1a6   : > { %v1777_v63 = vrot.slane %v1438_v55, %v3406_v24  ;;  %v1710_v46 = vmul.f32 %v4327_v27, %v1681_v5  ;;  %v4328_v39 = vunpack.i.h.bf16 %v3231_v34  ;;  %v1711_v55 = vmul.f32 %v4330_v19, %v1685_v29 }
 0x1a7   : > { %v1622_v23 = vadd.f32 %v1614_v25, %v1574_v22  ;;  %v1575_v62 = vadd.f32 %v1567_v42, %v1527_v49  ;;  %v1781_v22 = vrot.slane %v1439_v36, %v3406_v24  ;;  %v4329_v49 = vunpack.i.l.bf16 %v3247_v40 }
 0x1a8   : > { %v1663_v48 = vmul.f32 %v4328_v39, %v1637_v59  ;;  %v4331_v42 = vunpack.i.l.bf16 %v3456_v20  ;;  %v4332_v34 = vunpack.i.h.bf16 %v3247_v40  ;;  %v4335_v19 = vunpack.i.l.bf16 %v3223_v30 }
 0x1a9   : > { %v1670_v43 = vadd.f32 %v1662_v52, %v1622_v23  ;;  %v1623_v6 = vadd.f32 %v1615_v9, %v1575_v62  ;;  %v1758_v51 = vmul.f32 %v4329_v49, %v1729_v54  ;;  %v4333_v62 = vunpack.i.h.bf16 %v3456_v20 }
 0x1aa   : > { %v1806_v23 = vmul.f32 %v4331_v42, %v1777_v63  ;;  %v1759_v59 = vmul.f32 %v4332_v34, %v1733_v56 }
 0x1ab   : > { %v1718_v25 = vadd.f32 %v1710_v46, %v1670_v43  ;;  %v1671_v13 = vadd.f32 %v1663_v48, %v1623_v6  ;;  %v1807_v54 = vmul.f32 %v4333_v62, %v1781_v22  ;;  %v4337_v62 = vunpack.i.l.bf16 %v3249_v41 }
 0x1ad   : > { %v1766_v31 = vadd.f32 %v1758_v51, %v1718_v25  ;;  %v1719_v52 = vadd.f32 %v1711_v55, %v1671_v13  ;;  %v4334_v51 = vunpack.i.l.bf16 %v3219_v28 }
 0x1ae   : > { %v2779_v7 = vpop.f32.mrf.mxu0 }
 0x1af   : > { %v1415_v5 = vadd.f32 %v2779_v7, %v3817_v0  ;;  %v1814_v29 = vadd.f32 %v1806_v23, %v1766_v31  ;;  %v1767_v9 = vadd.f32 %v1759_v59, %v1719_v52  ;;  %v4336_v59 = vunpack.i.l.bf16 %v3227_v32 }
 0x1b0   : > { %v1409_v36 = vpop.f32.mrf.mxu0 }
 0x1b1   : > { %v3870_v50 = vmax.f32 %v1415_v5, 0.0  ;;  %v1410_v35 = vadd.f32 %v3817_v0, %v1409_v36  ;;  %2794 = vmatprep.mubr.msk.f32.mxu1 %vm1833_vm1, %v1814_v29  ;;  %v1815_v63 = vadd.f32 %v1807_v54, %v1767_v9 }
 0x1b3   : > { %v1440_v43 = vmax.f32 %v1410_v35, 0.0  ;;  %v1461_v27 = vrot.slane %v3870_v50, %v3259_v45  ;;  %2795 = vmatmul.mubr.msk.f32.vlgmr.msra.gmra.mxu1 %vm1833_vm1, %v1815_v63  ;;  %v1501_v22 = vrot.slane %v3870_v50, %v3263_v47  ;;  %v1549_v25 = vrot.slane %v3870_v50, %v3256_v44 }
 0x1b4   : > { %v1597_v5 = vrot.slane %v3870_v50, %v3302_v4  ;;  %v1645_v31 = vrot.slane %v3870_v50, %v3299_v3  ;;  %v1693_v52 = vrot.slane %v3870_v50, %v3317_v11  ;;  %v4338_v35 = vunpack.i.h.bf16 %v3219_v28 }
 0x1b5   : > { %v1457_v56 = vrot.slane %v1440_v43, %v3259_v45  ;;  %v1497_v20 = vrot.slane %v1440_v43, %v3263_v47  ;;  %v1545_v46 = vrot.slane %v1440_v43, %v3256_v44  ;;  %v1593_v6 = vrot.slane %v1440_v43, %v3302_v4 }
 0x1b6   : > { %v1641_v48 = vrot.slane %v1440_v43, %v3299_v3  ;;  %v1689_v7 = vrot.slane %v1440_v43, %v3317_v11  ;;  %v1737_v42 = vrot.slane %v1440_v43, %v3320_v12  ;;  %v1481_v29 = vmul.f32 %v4338_v35, %v1461_v27 }
 0x1b7   : > { %v1480_v13 = vmul.f32 %v4334_v51, %v1457_v56  ;;  %v1520_v55 = vmul.f32 %v4335_v19, %v1497_v20  ;;  %v1568_v36 = vmul.f32 %v4336_v59, %v1545_v46  ;;  %v1616_v54 = vmul.f32 %v4337_v62, %v1593_v6 }
 0x1b8   : > { %v2782_v40 = vpop.f32.mrf.mxu0  ;;  %v4339_v56 = vunpack.i.h.bf16 %v3223_v30  ;;  %v4340_v51 = vunpack.i.l.bf16 %v3324_v14  ;;  %v4341_v46 = vunpack.i.l.bf16 %v3426_v16  ;;  %v4342_v6 = vunpack.i.l.bf16 %v3556_v18 }
 0x1b9   : > { %v1425_v39 = vadd.f32 %v2782_v40, %v3817_v0  ;;  %v1528_v34 = vadd.f32 %v1520_v55, %v1480_v13  ;;  %v1785_v40 = vrot.slane %v1440_v43, %v3406_v24  ;;  %v1741_v43 = vrot.slane %v3870_v50, %v3320_v12 }
 0x1ba   : > { %v1419_v49 = vpop.f32.mrf.mxu0  ;;  %v1521_v20 = vmul.f32 %v4339_v56, %v1501_v22  ;;  %v1664_v13 = vmul.f32 %v4340_v51, %v1641_v48  ;;  %v1712_v19 = vmul.f32 %v4341_v46, %v1689_v7  ;;  %v1760_v28 = vmul.f32 %v4342_v6, %v1737_v42 }
 0x1bb   : > { %v1420_v23 = vadd.f32 %v3817_v0, %v1419_v49  ;;  %v3906_v9 = vmax.f32 %v1425_v39, 0.0  ;;  %v1576_v49 = vadd.f32 %v1568_v36, %v1528_v34  ;;  %v4343_v39 = vunpack.i.h.bf16 %v3227_v32 }
 0x1bc   : > { %v1529_v27 = vadd.f32 %v1521_v20, %v1481_v29  ;;  %v4345_v34 = vunpack.i.l.bf16 %v3644_v10  ;;  %v4346_v59 = vunpack.i.l.bf16 %v3229_v33  ;;  %v4348_v35 = vunpack.i.h.bf16 %v3426_v16 }
 0x1bd   : > { %v3908_v63 = vmax.f32 %v1420_v23, 0.0  ;;  %v1569_v55 = vmul.f32 %v4343_v39, %v1549_v25  ;;  %v1624_v22 = vadd.f32 %v1616_v54, %v1576_v49  ;;  %v4344_v23 = vunpack.i.h.bf16 %v3249_v41 }
 0x1be   : > { %v1808_v32 = vmul.f32 %v4345_v34, %v1785_v40  ;;  %v4347_v41 = vunpack.i.h.bf16 %v3324_v14  ;;  %v1713_v29 = vmul.f32 %v4348_v35, %v1693_v52  ;;  %v4349_v56 = vunpack.i.l.bf16 %v3242_v37  ;;  %v4351_v14 = vld [vmem:[#allocation4_spill] sm:$0xff] }
 0x1bf   : > { %v1465_v30 = vrot.slane %v3908_v63, %v3259_v45  ;;  %v1617_v48 = vmul.f32 %v4344_v23, %v1597_v5  ;;  %v1505_v7 = vrot.slane %v3908_v63, %v3263_v47  ;;  %v1553_v42 = vrot.slane %v3908_v63, %v3256_v44 }
 0x1c0   : > { %v1577_v25 = vadd.f32 %v1569_v55, %v1529_v27  ;;  %v1601_v62 = vrot.slane %v3908_v63, %v3302_v4  ;;  %v1672_v54 = vadd.f32 %v1664_v13, %v1624_v22  ;;  %v1665_v5 = vmul.f32 %v4347_v41, %v1645_v31 }
 0x1c1   : > { %v1482_v36 = vmul.f32 %v4346_v59, %v1465_v30  ;;  %v1522_v20 = vmul.f32 %v4349_v56, %v1505_v7  ;;  %v4350_v40 = vunpack.i.h.bf16 %v3556_v18  ;;  %v1789_v46 = vrot.slane %v3870_v50, %v3406_v24  ;;  %v4353_v30 = vld [vmem:[#allocation6_spill] sm:$0xff] }
 0x1c2   : > { %v1625_v49 = vadd.f32 %v1617_v48, %v1577_v25  ;;  %v1649_v6 = vrot.slane %v3908_v63, %v3299_v3  ;;  %v1720_v13 = vadd.f32 %v1712_v19, %v1672_v54  ;;  %v4352_v31 = vunpack.i.l.bf16 %v4351_v14  ;;  %v2785_v52 = vpop.f32.mrf.mxu0  ;;  %v4355_v48 = vld [vmem:[#allocation7_spill] sm:$0xff] }
 0x1c3   : > { %v1761_v51 = vmul.f32 %v4350_v40, %v1741_v43  ;;  %v1530_v27 = vadd.f32 %v1522_v20, %v1482_v36  ;;  %v1469_v16 = vrot.slane %v3906_v9, %v3259_v45  ;;  %v4354_v22 = vunpack.i.l.bf16 %v4353_v30 }
 0x1c4   : > { %v1570_v39 = vmul.f32 %v4352_v31, %v1553_v42  ;;  %v1673_v55 = vadd.f32 %v1665_v5, %v1625_v49  ;;  %v1697_v43 = vrot.slane %v3908_v63, %v3317_v11  ;;  %v1745_v50 = vrot.slane %v3908_v63, %v3320_v12  ;;  %v1429_v25 = vpop.f32.mrf.mxu0 }
 0x1c5   : > { %v1618_v18 = vmul.f32 %v4354_v22, %v1601_v62  ;;  %v1768_v23 = vadd.f32 %v1760_v28, %v1720_v13  ;;  %v4356_v7 = vunpack.i.l.bf16 %v4355_v48  ;;  %v1793_v42 = vrot.slane %v3908_v63, %v3406_v24 }
 0x1c6   : > { %v1578_v19 = vadd.f32 %v1570_v39, %v1530_v27  ;;  %v1721_v59 = vadd.f32 %v1713_v29, %v1673_v55  ;;  %v4357_v36 = vunpack.i.h.bf16 %v3229_v33  ;;  %v1509_v62 = vrot.slane %v3906_v9, %v3263_v47  ;;  %v4360_v27 = vld [vmem:[#allocation8_spill] sm:$0xff] }
 0x1c7   : > { %v1666_v34 = vmul.f32 %v4356_v7, %v1649_v6  ;;  %v1557_v41 = vrot.slane %v3906_v9, %v3256_v44  ;;  %v1435_v28 = vadd.f32 %v2785_v52, %v3817_v0  ;;  %v1430_v5 = vadd.f32 %v3817_v0, %v1429_v25 }
 0x1c8   : > { %v1483_v54 = vmul.f32 %v4357_v36, %v1469_v16  ;;  %v1816_v35 = vadd.f32 %v1808_v32, %v1768_v23  ;;  %v1626_v56 = vadd.f32 %v1618_v18, %v1578_v19  ;;  %v1769_v20 = vadd.f32 %v1761_v51, %v1721_v59 }
 0x1c9   : > { %v4358_v63 = vunpack.i.h.bf16 %v3644_v10  ;;  %v4359_v29 = vunpack.i.h.bf16 %v3242_v37  ;;  %v1605_v40 = vrot.slane %v3906_v9, %v3302_v4  ;;  %v3977_v6 = vmax.f32 %v1430_v5, 0.0 }
 0x1ca   : > { %2797 = vmatprep.mubr.msk.f32.mxu1 %vm1833_vm1, %v1816_v35  ;;  %v1674_v13 = vadd.f32 %v1666_v34, %v1626_v56  ;;  %v4361_v31 = vunpack.i.l.bf16 %v4360_v27  ;;  %v1762_v32 = vmul.f32 %v3023_v15, %v1745_v50  ;;  %v1653_v39 = vrot.slane %v3906_v9, %v3299_v3 }
 0x1cb   : > { %v1809_v49 = vmul.f32 %v4358_v63, %v1789_v46  ;;  %v1523_v33 = vmul.f32 %v4359_v29, %v1509_v62  ;;  %v4362_v46 = vunpack.i.h.bf16 %v4351_v14  ;;  %v3988_v16 = vmax.f32 %v1435_v28, 0.0  ;;  %v4367_v62 = vld [vmem:[#allocation5_spill] sm:$0xff]  ;;  %v4370_v29 = vld [vmem:[#allocation3_spill] sm:$0xff] }
 0x1cc   : > { %v1714_v0 = vmul.f32 %v4361_v31, %v1697_v43  ;;  %v4363_v55 = vunpack.i.l.bf16 %v3624_v21  ;;  %v1701_v18 = vrot.slane %v3906_v9, %v3317_v11  ;;  %v4364_v43 = vunpack.i.h.bf16 %v4353_v30 }
 0x1cd   : > { %v1817_v51 = vadd.f32 %v1809_v49, %v1769_v20  ;;  %v1531_v10 = vadd.f32 %v1523_v33, %v1483_v54  ;;  %v1571_v37 = vmul.f32 %v4362_v46, %v1557_v41  ;;  %v1473_v14 = vrot.slane %v3977_v6, %v3259_v45 }
 0x1ce   : > { %v1722_v52 = vadd.f32 %v1714_v0, %v1674_v13  ;;  %v1810_v22 = vmul.f32 %v4363_v55, %v1793_v42  ;;  %v1619_v50 = vmul.f32 %v4364_v43, %v1605_v40  ;;  %v1513_v23 = vrot.slane %v3977_v6, %v3263_v47 }
 0x1cf   : > { %2798 = vmatmul.mubr.msk.f32.gmra.mxu1 %vm1833_vm1, %v1817_v51  ;;  %v1579_v15 = vadd.f32 %v1571_v37, %v1531_v10  ;;  %v1749_v7 = vrot.slane %v3906_v9, %v3320_v12  ;;  %v1561_v34 = vrot.slane %v3977_v6, %v3256_v44  ;;  %v1609_v42 = vrot.slane %v3977_v6, %v3302_v4 }
 0x1d0   : > { %v1770_v19 = vadd.f32 %v1762_v32, %v1722_v52  ;;  %v4365_v30 = vunpack.i.h.bf16 %v4355_v48  ;;  %v4366_v36 = vunpack.i.l.bf16 %v3359_v61  ;;  %v4368_v41 = vunpack.i.l.bf16 %v4367_v62 }
 0x1d1   : > { %v1627_v25 = vadd.f32 %v1619_v50, %v1579_v15  ;;  %v4369_v35 = vunpack.i.h.bf16 %v4360_v27  ;;  %v1797_v20 = vrot.slane %v3906_v9, %v3406_v24  ;;  %v4371_v33 = vunpack.i.l.bf16 %v4370_v29 }
 0x1d2   : > { %v1667_v59 = vmul.f32 %v4365_v30, %v1653_v39  ;;  %v1484_v54 = vmul.f32 %v4366_v36, %v1473_v14  ;;  %v1524_v28 = vmul.f32 %v4368_v41, %v1513_v23  ;;  %v1818_v5 = vadd.f32 %v1810_v22, %v1770_v19 }
 0x1d3   : > { %v1715_v56 = vmul.f32 %v4369_v35, %v1701_v18  ;;  %v1572_v40 = vmul.f32 %v4371_v33, %v1561_v34  ;;  %v1657_v48 = vrot.slane %v3977_v6, %v3299_v3  ;;  %v1763_v13 = vmul.f32 %v3024_v38, %v1749_v7  ;;  %v2112_v33 = vld [vmem:[%s4195_s9] sm:$0xff] }
 0x1d4   : > { %v1675_v63 = vadd.f32 %v1667_v59, %v1627_v25  ;;  %v1532_v49 = vadd.f32 %v1524_v28, %v1484_v54  ;;  %2800 = vmatprep.mubr.msk.f32.mxu1 %vm1833_vm1, %v1818_v5  ;;  %v4372_v31 = vunpack.i.l.bf16 %v3526_v17  ;;  %v1477_v0 = vrot.slane %v3988_v16, %v3259_v45 }
 0x1d5   : > { %v1517_v9 = vrot.slane %v3988_v16, %v3263_v47  ;;  %v1705_v10 = vrot.slane %v3977_v6, %v3317_v11  ;;  %v1565_v46 = vrot.slane %v3988_v16, %v3256_v44  ;;  %v1811_v38 = vmul.f32 %v4373_v26, %v1797_v20 }
 0x1d6   : > { %v1620_v27 = vmul.f32 %v4372_v31, %v1609_v42  ;;  %v1723_v32 = vadd.f32 %v1715_v56, %v1675_v63  ;;  %v1580_v51 = vadd.f32 %v1572_v40, %v1532_v49  ;;  %v4374_v37 = vunpack.i.h.bf16 %v3359_v61  ;;  %v4102_v49 = vld [vmem:[%s613_s23] sm:$0xff] }
 0x1d7   : > { %v4375_v52 = vunpack.i.h.bf16 %v4367_v62  ;;  %v1613_v47 = vrot.slane %v3988_v16, %v3302_v4  ;;  %v1668_v15 = vmul.f32 %v3017_v2, %v1657_v48  ;;  %v1753_v44 = vrot.slane %v3977_v6, %v3320_v12  ;;  %v4121_v48 = vld [vmem:[%s4194_s8] ss:$0 sm:$0xff] }
 0x1d8   : > { %v1485_v39 = vmul.f32 %v4374_v37, %v1477_v0  ;;  %v1771_v22 = vadd.f32 %v1763_v13, %v1723_v32  ;;  %v1628_v18 = vadd.f32 %v1620_v27, %v1580_v51  ;;  %v4376_v21 = vunpack.i.h.bf16 %v4370_v29  ;;  %v2113_v29 = vld [vmem:[%s4195_s9 + $0x8] sm:$0xff]  ;;  %v1992_v0 = vpop.permute.xlu1 %1991  ;;  %v1987_v51 = vpop.permute.xlu0 %1986 }
 0x1d9   : > { %v1525_v55 = vmul.f32 %v4375_v52, %v1517_v9  ;;  %v1661_v61 = vrot.slane %v3988_v16, %v3299_v3  ;;  %v1716_v4 = vmul.f32 %v3029_v57, %v1705_v10  ;;  %v1801_v19 = vrot.slane %v3977_v6, %v3406_v24  ;;  %v2303_v13 = vld [vmem:[%s4198_s12 + $0x8] sm:$0xff] }
 0x1da   : > { %v1573_v50 = vmul.f32 %v4376_v21, %v1565_v46  ;;  %v1819_v14 = vadd.f32 %v1811_v38, %v1771_v22  ;;  %v1676_v23 = vadd.f32 %v1668_v15, %v1628_v18  ;;  %v4377_v2 = vunpack.i.h.bf16 %v3526_v17 }
 0x1db   : > { %v1533_v43 = vadd.f32 %v1525_v55, %v1485_v39  ;;  %v1709_v42 = vrot.slane %v3988_v16, %v3317_v11  ;;  %v1764_v3 = vmul.f32 %v3041_v60, %v1753_v44  ;;  %v4378_v59 = vunpack.i.h.bf16 %v3596_v58 }
 0x1dc   : > { %v1621_v34 = vmul.f32 %v4377_v2, %v1613_v47  ;;  %2801 = vmatmul.mubr.msk.f32.gmra.mxu1 %vm1833_vm1, %v1819_v14  ;;  %v1724_v25 = vadd.f32 %v1716_v4, %v1676_v23  ;;  %v1757_v6 = vrot.slane %v3988_v16, %v3320_v12  ;;  %v4379_v17 = vunpack.i.l.bf16 %v3778_v53  ;;  %v1982_v39 = vpop.permute.xlu1 %1981  ;;  %v1997_v22 = vpop.permute.xlu0 %1996 }
 0x1dd   : > { %v1581_v7 = vadd.f32 %v1573_v50, %v1533_v43  ;;  %v1669_v57 = vmul.f32 %v4378_v59, %v1661_v61  ;;  %v4380_v11 = vunpack.i.h.bf16 %v3740_v1  ;;  %v1805_v28 = vrot.slane %v3988_v16, %v3406_v24  ;;  %v2117_v1 = vld [vmem:[%s4196_s10 + $0x18] sm:$0xff]  ;;  %v2114_v16 = vld [vmem:[%s4196_s10] sm:$0xff] }
 0x1de   : > { %v1772_v36 = vadd.f32 %v1764_v3, %v1724_v25  ;;  %v1812_v54 = vmul.f32 %v4379_v17, %v1801_v19  ;;  %v4381_v58 = vunpack.i.h.bf16 %v3761_v8  ;;  %v4382_v56 = vunpack.i.h.bf16 %v3778_v53  ;;  %v2116_v8 = vld [vmem:[%s4196_s10 + $0x10] sm:$0xff]  ;;  %v2115_v53 = vld [vmem:[%s4196_s10 + $0x8] sm:$0xff] }
 0x1df   : > { %v1629_v30 = vadd.f32 %v1621_v34, %v1581_v7  ;;  %v1717_v41 = vmul.f32 %v4380_v11, %v1709_v42  ;;  %v3071_v24 = vmov 0.0  }
 0x1e0   : > { %v1820_v5 = vadd.f32 %v1812_v54, %v1772_v36  ;;  %v1765_v35 = vmul.f32 %v4381_v58, %v1757_v6  ;;  %v1813_v20 = vmul.f32 %v4382_v56, %v1805_v28  ;;  %2806 = vmatprep.subr.mxu0 %v3071_v24  ;;  %2814 = vmatprep.mubr.msk.f32.mxu0 %vm3072_vm2, %v3071_v24  ;;  %v2002_v34 = vpop.permute.xlu1 %2001 }
 0x1e1   : > { %v1677_v62 = vadd.f32 %v1669_v57, %v1629_v30  ;;  %2807 = vmatpush3.msra.mxu0 %v2117_v1  ;;  %2824 = vmatprep.subr.mxu1 %v3071_v24  ;;  %v2007_v57 = vpop.permute.xlu0 %2006 }
 0x1e2   : > { %2803 = vmatprep.mubr.msk.f32.mxu1 %vm1833_vm1, %v1820_v5  ;;  %2808 = vmatprep.subr.mxu0 %v3071_v24 }
 0x1e3   : > { %v1725_v60 = vadd.f32 %v1717_v41, %v1677_v62  ;;  %2809 = vmatpush3.msra.mxu0 %v2116_v8  ;;  %2825 = vmatpush3.msra.mxu1 %v2303_v13 }
 0x1e4   : > { %2810 = vmatprep.subr.mxu0 %v3071_v24  ;;  %2826 = vmatprep.subr.mxu1 %v3071_v24  ;;  %v2012_v5 = vpop.permute.xlu1 %2011 }
 0x1e5   : > { %v1773_v12 = vadd.f32 %v1765_v35, %v1725_v60  ;;  %2811 = vmatpush3.msra.mxu0 %v2115_v53 }
 0x1e6   : > { %2812 = vmatprep.subr.mxu0 %v3071_v24 }
 0x1e7   : > { %v1821_v63 = vadd.f32 %v1813_v20, %v1773_v12  ;;  %2813 = vmatpush3.msra.mxu0 %v2114_v16 }
 0x1e8   : > { %2815 = vmatmul.mubr.msk.f32.vlgmr.msra.gmra.mxu0 %vm1833_vm1, %v4102_v49  ;;  %2817 = vmatprep.subr.mxu0 %v3071_v24  ;;  %v4140_v13 = vpop.permute.xlu1 %2086 }
 0x1e9   : > { %2804 = vmatmul.mubr.msk.f32.gmra.mxu1 %vm1833_vm1, %v1821_v63  ;;  %2818 = vmatpush3.msra.mxu0 %v2113_v29 }
 0x1ea   : > { %2828 = vmatprep.mubr.msk.f32.mxu1 %vm3072_vm2, %v3071_v24  ;;  %2821 = vmatprep.mubr.msk.f32.mxu0 %vm3072_vm2, %v3071_v24 }
 0x1eb   : > { %2819 = vmatprep.subr.mxu0 %v3071_v24 }
 0x1ec   : > { %2820 = vmatpush3.msra.mxu0 %v2112_v33 }
 0x1ed   : > { %2831 = vmatprep.subr.mxu0 %v3071_v24 }
 0x273   : > { %v2796_v40 = vpop.f32.mrf.mxu1 }
 0x274   : > { %v1930_v31 = vadd.f32 %v2796_v40, %v4121_v48 }
 0x275   : > { %v1924_v27 = vpop.f32.mrf.mxu1 }
 0x276   : > { %v1964_v9 = vmax.f32 %v1930_v31, 0.0  ;;  %v1925_v32 = vadd.f32 %v4121_v48, %v1924_v27 }
 0x278   : > { %v1963_v26 = vmax.f32 %v1925_v32, 0.0  ;;  %v2020_v38 = vmul.f32 %v1987_v51, %v1964_v9  ;;  %v2017_v51 = vpop.permute.xlu0 %2016 }
 0x27a   : > { %v2034_v18 = vsel %vm1308_vm0, %v2020_v38, 0.0  ;;  %v2019_v15 = vmul.f32 %v1982_v39, %v1963_v26  ;;  %v2088_v39 = vrot.slane %v4140_v13, 1 }
 0x27b   : > { %v2035_v21 = vrot.slane %v2034_v18, 4 }
 0x27c   : > { %v2027_v61 = vsel %vm1308_vm0, %v2019_v15, 0.0 }
 0x27d   : > { %v2036_v19 = vadd.f32 %v2035_v21, %v2034_v18  ;;  %v2028_v7 = vrot.slane %v2027_v61, 4  ;;  %v2089_v21 = vrot.slane %v4140_v13, 2 }
 0x27f   : > { %v2037_v6 = vrot.slane %v2036_v19, 2  ;;  %v2029_v36 = vadd.f32 %v2028_v7, %v2027_v61 }
 0x281   : > { %v2038_v58 = vadd.f32 %v2037_v6, %v2036_v19  ;;  %v2030_v35 = vrot.slane %v2029_v36, 2 }
 0x283   : > { %v2039_v29 = vrot.slane %v2038_v58, 1  ;;  %v2031_v33 = vadd.f32 %v2030_v35, %v2029_v36 }
 0x285   : > { %v2040_v38 = vadd.f32 %v2039_v29, %v2038_v58 }
 0x287   : > { %v2104_v61 = vmul.f32 %v2088_v39, %v2040_v38 }
 0x28f   : > { %v2799_v10 = vpop.f32.mrf.mxu1 }
 0x290   : > { %v1940_v46 = vadd.f32 %v2799_v10, %v4121_v48 }
 0x291   : > { %v1934_v37 = vpop.f32.mrf.mxu1 }
 0x292   : > { %v1935_v52 = vadd.f32 %v4121_v48, %v1934_v37  ;;  %v1966_v55 = vmax.f32 %v1940_v46, 0.0  ;;  %v2032_v37 = vrot.slane %v2031_v33, 1 }
 0x294   : > { %v1965_v47 = vmax.f32 %v1935_v52, 0.0  ;;  %v2022_v43 = vmul.f32 %v1997_v22, %v1966_v55 }
 0x296   : > { %v2021_v44 = vmul.f32 %v1992_v0, %v1965_v47  ;;  %v2048_v23 = vsel %vm1308_vm0, %v2022_v43, 0.0 }
 0x297   : > { %v2049_v3 = vrot.slane %v2048_v23, 4 }
 0x298   : > { %v2041_v50 = vsel %vm1308_vm0, %v2021_v44, 0.0 }
 0x299   : > { %v2042_v14 = vrot.slane %v2041_v50, 4  ;;  %v2050_v11 = vadd.f32 %v2049_v3, %v2048_v23 }
 0x29b   : > { %v2043_v42 = vadd.f32 %v2042_v14, %v2041_v50  ;;  %v2051_v63 = vrot.slane %v2050_v11, 2  ;;  %v2033_v50 = vadd.f32 %v2032_v37, %v2031_v33 }
 0x29c   : > { %v2802_v4 = vpop.f32.mrf.mxu1 }
 0x29d   : > { %v1950_v2 = vadd.f32 %v2802_v4, %v4121_v48  ;;  %v2044_v62 = vrot.slane %v2043_v42, 2  ;;  %v2052_v9 = vadd.f32 %v2051_v63, %v2050_v11  ;;  %v2103_v3 = vmul.f32 %v4140_v13, %v2033_v50 }
 0x29e   : > { %v1944_v25 = vpop.f32.mrf.mxu1  ;;  %v2094_v63 = vrot.slane %v4140_v13, 7 }
 0x29f   : > { %v1968_v30 = vmax.f32 %v1950_v2, 0.0  ;;  %v1945_v59 = vadd.f32 %v4121_v48, %v1944_v25  ;;  %v2045_v56 = vadd.f32 %v2044_v62, %v2043_v42  ;;  %v2053_v18 = vrot.slane %v2052_v9, 1 }
 0x2a0   : > { %v2091_v42 = vrot.slane %v4140_v13, 4 }
 0x2a1   : > { %v2024_v17 = vmul.f32 %v2007_v57, %v1968_v30  ;;  %v1967_v54 = vmax.f32 %v1945_v59, 0.0  ;;  %v2046_v31 = vrot.slane %v2045_v56, 1  ;;  %v2054_v7 = vadd.f32 %v2053_v18, %v2052_v9 }
 0x2a2   : > { %v2199_v30 = vrot.slane %v2104_v61, 7  ;;  %v2090_v59 = vrot.slane %v4140_v13, 3  ;;  %v2542_v61 = vpop.permute.xlu0 %2541 }
 0x2a3   : > { %v2062_v41 = vsel %vm1308_vm0, %v2024_v17, 0.0  ;;  %v2023_v28 = vmul.f32 %v2002_v34, %v1967_v54  ;;  %v2047_v55 = vadd.f32 %v2046_v31, %v2045_v56 }
 0x2a4   : > { %v2063_v60 = vrot.slane %v2062_v41, 4  ;;  %v2106_v54 = vmul.f32 %v2090_v59, %v2054_v7 }
 0x2a5   : > { %v2055_v12 = vsel %vm1308_vm0, %v2023_v28, 0.0  ;;  %v2105_v23 = vmul.f32 %v2089_v21, %v2047_v55  ;;  %v2201_v28 = vsel %vm2200_vm3, %v2199_v30, %v2103_v3  ;;  %v2387_v55 = vld [vmem:[%s4201_s15] sm:$0x1] }
 0x2a6   : > { %v2056_v20 = vrot.slane %v2055_v12, 4  ;;  %v2064_v1 = vadd.f32 %v2063_v60, %v2062_v41  ;;  %v2205_v56 = vrot.slane %v2106_v54, 5 }
 0x2a7   : > { %v2202_v6 = vrot.slane %v2105_v23, 6 }
 0x2a8   : > { %v2057_v53 = vadd.f32 %v2056_v20, %v2055_v12  ;;  %v2065_v32 = vrot.slane %v2064_v1, 2 }
 0x2a9   : > { %v2805_v8 = vpop.f32.mrf.mxu1  ;;  %v2204_v58 = vsel %vm2203_vm4, %v2202_v6, %v2201_v28 }
 0x2aa   : > { %v1960_v16 = vadd.f32 %v2805_v8, %v4121_v48  ;;  %v2058_v27 = vrot.slane %v2057_v53, 2  ;;  %v2066_v15 = vadd.f32 %v2065_v32, %v2064_v1  ;;  %v2093_v8 = vrot.slane %v4140_v13, 6 }
 0x2ab   : > { %v1954_v40 = vpop.f32.mrf.mxu1 }
 0x2ac   : > { %v1970_v0 = vmax.f32 %v1960_v16, 0.0  ;;  %v1955_v10 = vadd.f32 %v4121_v48, %v1954_v40  ;;  %v2059_v46 = vadd.f32 %v2058_v27, %v2057_v53  ;;  %v2067_v2 = vrot.slane %v2066_v15, 1 }
 0x2ad   : > { %v2207_v53 = vsel %vm2206_vm5, %v2205_v56, %v2204_v58 }
 0x2ae   : > { %v2026_v26 = vmul.f32 %v2017_v51, %v1970_v0  ;;  %v1969_v52 = vmax.f32 %v1955_v10, 0.0  ;;  %v2060_v47 = vrot.slane %v2059_v46, 1  ;;  %v2068_v62 = vadd.f32 %v2067_v2, %v2066_v15  ;;  %v2302_v10 = vld [vmem:[%s4198_s12] sm:$0xff] }
 0x2af   : > { %2827 = vmatpush3.msra.mxu1 %v2302_v10 }
 0x2b0   : > { %v2076_v22 = vsel %vm1308_vm0, %v2026_v26, 0.0  ;;  %v2025_v43 = vmul.f32 %v2012_v5, %v1969_v52  ;;  %v2061_v4 = vadd.f32 %v2060_v47, %v2059_v46  ;;  %v2092_v5 = vrot.slane %v4140_v13, 5  ;;  %v2187_v13 = vpop.f32.mrf.mxu0  ;;  %2836 = vmatprep.subr.mxu1 %v3071_v24  ;;  %v2685_v26 = vld [vmem:[%s4197_s11] ss:$0 sm:$0xff] }
 0x2b1   : > { %v2077_v44 = vrot.slane %v2076_v22, 4  ;;  %v2686_v47 = vld [vmem:[%s4199_s13] ss:$0 sm:$0xff] }
 0x2b2   : > { %v2069_v14 = vsel %vm1308_vm0, %v2025_v43, 0.0  ;;  %v2107_v36 = vmul.f32 %v2091_v42, %v2061_v4  ;;  %v2108_v20 = vmul.f32 %v2092_v5, %v2068_v62  ;;  %v2816_v51 = vpop.f32.mrf.mxu0 }
 0x2b3   : > { %v2078_v48 = vadd.f32 %v2077_v44, %v2076_v22  ;;  %v2070_v19 = vrot.slane %v2069_v14, 4 }
 0x2b4   : > { %v2208_v35 = vrot.slane %v2107_v36, 4  ;;  %v2211_v40 = vrot.slane %v2108_v20, 3 }
 0x2b5   : > { %v2079_v34 = vrot.slane %v2078_v48, 2  ;;  %v2071_v25 = vadd.f32 %v2070_v19, %v2069_v14  ;;  %v2547_v14 = vrot.slane %v2542_v61, %v3259_v45 }
 0x2b6   : > { %v2210_v33 = vsel %vm2209_vm6, %v2208_v35, %v2207_v53 }
 0x2b7   : > { %v2080_v57 = vadd.f32 %v2079_v34, %v2078_v48  ;;  %v2072_v17 = vrot.slane %v2071_v25, 2  ;;  %v2213_v27 = vsel %vm2212_vm7, %v2211_v40, %v2210_v33 }
 0x2b9   : > { %v2081_v11 = vrot.slane %v2080_v57, 1  ;;  %v2073_v41 = vadd.f32 %v2072_v17, %v2071_v25 }
 0x2bb   : > { %v2082_v60 = vadd.f32 %v2081_v11, %v2080_v57  ;;  %v2074_v12 = vrot.slane %v2073_v41, 1 }
 0x2bd   : > { %v2075_v1 = vadd.f32 %v2074_v12, %v2073_v41  ;;  %v2110_v16 = vmul.f32 %v2094_v63, %v2082_v60 }
 0x2bf   : > { %v2109_v29 = vmul.f32 %v2093_v8, %v2075_v1  ;;  %v2217_v0 = vrot.slane %v2110_v16, 1 }
 0x2c1   : > { %v2214_v31 = vrot.slane %v2109_v29, 2 }
 0x2c3   : > { %v2216_v9 = vsel %vm2215_vm8, %v2214_v31, %v2213_v27 }
 0x2c4   : > { %v2219_v32 = vsel %vm2218_vm9, %v2217_v0, %v2216_v9 }
 0x2c5   : > { %2822 = vmatmul.mubr.msk.f32.vlgmr.msra.gmra.mxu0 %vm1308_vm0, %v2219_v32 }
 0x2c6   : > { %2832 = vmatpush3.xpose.msk.msra.mxu0 %vm1833_vm1, %v4102_v49  ;;  %2833 = vmatprep.mubr.msk.f32.mxu0 %vm3072_vm2, %v3071_v24 }
 0x2c9   : > { %2834 = vmatmul.mubr.msk.f32.vlgmr.msra.gmra.mxu0 %vm1833_vm1, %v2387_v55 }
 0x385   : > { %v2288_v46 = vpop.f32.mrf.mxu0 }
 0x386   : > { %v2289_v38 = vadd.f32 %v2288_v46, %v2187_v13 }
 0x387   : > { %v2823_v37 = vpop.f32.mrf.mxu0 }
 0x388   : > { %v2299_v49 = vadd.f32 %v2685_v26, %v2289_v38 }
 0x389   : > { %v2457_v21 = vpop.f32.mrf.mxu0 }
 0x38a   : > { %v2300_v39 = vmul.f32 0.01, %v2299_v49 }
 0x38b   : > { %v2835_v50 = vpop.f32.mrf.mxu0 }
 0x38c   : > { %v2301_v52 = vmax.f32 %v2299_v49, %v2300_v39 }
 0x38e   : > { %2829 = vmatmul.mubr.msk.f32.vlgmr.msra.gmra.mxu1 %vm1308_vm0, %v2301_v52 }
 0x38f   : > { %2838 = vmatprep.mubr.msk.f32.mxu1 %vm3072_vm2, %v3071_v24  ;;  %v2386_v24 = vld [vmem:[%s4200_s14] sm:$0x1] }
 0x44e   : > { %v2380_v22 = vpop.f32.mrf.mxu1 }
 0x44f   : > { %v2381_v18 = vadd.f32 %v2686_v47, %v2380_v22 }
 0x450   : > { %v2830_v15 = vpop.f32.mrf.mxu1 }
 0x451   : > { %v2384_v44 = vmul.f32 0.01, %v2381_v18 }
 0x453   : > { %v2385_v43 = vmax.f32 %v2381_v18, %v2384_v44 }
 0x455   : > { %2837 = vmatpush3.xpose.msk.msra.mxu1 %vm2461_vm10, %v2385_v43 }
 0x458   : > { %2839 = vmatmul.mubr.msk.f32.vlgmr.msra.gmra.mxu1 %vm2461_vm10, %v2386_v24 }
 0x518   : > { %v2534_v48 = vpop.f32.mrf.mxu1 }
 0x519   : > { %v2535_v23 = vadd.f32 %v2534_v48, %v2457_v21 }
 0x51a   : > { %v2840_v4 = vpop.f32.mrf.mxu1 }
 0x51b   : > { %v2548_v19 = vadd.f32 %v2547_v14, %v2535_v23 }
 0x51d   : > { %v2692_v7 = vmul.f32 -1.442695, %v2548_v19 }
 0x51f   : > { %3051 = vpow2.f32 %v2692_v7 }
 0x52c   : > { %v3052_v2 = vpop.eup %3051 }
 0x52d   : > { %v2552_v34 = vadd.f32 1.0, %v3052_v2 }
 0x52f   : > { %3053 = vrcp.f32 %v2552_v34 }
 0x53c   : > { %v3054_v42 = vpop.eup %3053 }
 0x53d   : > { %2556 = vst.msk [vmem:[%s626_s20] sm:$0x1] %vm2555_vm11, %v3054_v42 }
 0x53e PF: > { %s29_s26 = sadd.s32 1, %s3061_s26  }
 0x53f   : > { %p26_p5 = scmp.ge.s32.totalorder %s29_s26, 4  }
 0x541   :  { %28 = sbr.rel (!%p26_p5) target bundleno = 3 (0x3), region = 130 }

</bundles_post_ra>
